<compile_context>
chip_gen: v7x
topology: tpu7x:2x2x1
jax: 0.10.0
libtpu: 0.0.40
codegen_flags: <defaults>
</compile_context>

<pallas_src>
import math

import jax
import jax.numpy as jnp
from jax import lax
from jax.experimental import pallas as pl
from jax.experimental.pallas import tpu as pltpu

LANE = 128
SUBLANE = 8
NUM_LAYERS = 2          # num_layers in S4DNeuroModel
DT_MIN, DT_MAX = 0.001, 0.1
GELU_APPROX_TANH = True  # tanh-approx GELU on the EUP; False -> exact erf (nn.GELU)


# ----------------------------------------------------------------------------
# Pallas kernel: whole forward pass for one batch tile per grid step.
# ----------------------------------------------------------------------------
def _s4d_neuro_kernel(x_ref, w_in_ref, b_in_ref, bank_ref, d_ref,
                      wglu_ref, bglu_ref, w_out_ref, b_out_ref, o_ref,
                      u_scr, acc_scr):
    Bt, L, D_in = x_ref.shape
    NL = bank_ref.shape[0]
    Hp = w_in_ref.shape[1]
    Dp_out = w_out_ref.shape[1]
    M = Bt * L
    two_l = 2 * L

    # input_projection (Linear): bf16 operands on the MXU, f32 accumulation.
    # Reshape merges sublane-major dims only (L % 8 == 0) -> layout no-op.
    x2 = x_ref[...].reshape(M, D_in)
    u2 = jnp.dot(x2, w_in_ref[...],
                 preferred_element_type=jnp.float32) + b_in_ref[...]   # (M, Hp) f32

    inv_sqrt2 = 1.0 / math.sqrt(2.0)
    for l in range(NL):
        # ---- S4D layer l -------------------------------------------------
        # Causal depthwise SSM conv, streamed from the pre-shifted kernel bank:
        #   y[b,t,h] = D[h]*u[b,t,h] + sum_{tau<=t} k_l[h, t-tau] * u[b,tau,h]
        # bank_ref[l] holds 8 sublane-shifted copies of kz = [zeros(L); k_l^T],
        # flattened to (8*2L, Hp), so every per-tau (L, Hp) slice is 8-aligned.
        bank_l = bank_ref.at[l]                                # (8*2L, Hp) view
        u3 = u2.reshape(Bt, L, Hp)                             # layout no-op
        u_scr[...] = u3                                        # layer input in VMEM
        acc_scr[...] = u3 * d_ref[l]                           # skip term u * D

        def conv_block(m, carry, bank_l=bank_l):
            # 8 time taps tau = 8m .. 8m+7 per iteration; all loads aligned.
            t0 = pl.multiple_of(8 * m, 8)
            u_blk = u_scr[:, pl.ds(t0, 8), :]                  # (Bt, 8, Hp)
            base = L - 8 * m
            contrib = None
            for q in range(8):                                 # static unroll
                r0 = (8 - q) % 8                               # pre-shifted copy id
                row0 = r0 * two_l + base - (8 if q else 0)     # multiple of 8
                k_sl = bank_l[pl.ds(pl.multiple_of(row0, 8), L), :]     # (L, Hp)
                term = k_sl[None, :, :] * u_blk[:, q:q + 1, :]
                contrib = term if contrib is None else contrib + term
            acc_scr[...] += contrib                            # one RMW per 8 taps
            return carry

        lax.fori_loop(0, L // SUBLANE, conv_block, 0)
        y2 = acc_scr[...].reshape(M, Hp)                       # layout no-op

        # GELU; DropoutNd is identity in eval mode (intentionally omitted).
        if GELU_APPROX_TANH:
            y2 = jax.nn.gelu(y2, approximate=True)
        else:
            y2 = 0.5 * y2 * (1.0 + lax.erf(y2 * inv_sqrt2))

        # output_linear: Conv1d(H, 2H, 1) + GLU fused into ONE MXU matmul.
        z = jnp.dot(y2.astype(jnp.bfloat16), wglu_ref[l],
                    preferred_element_type=jnp.float32) + bglu_ref[l]  # (M, 2Hp)
        u2 = z[:, :Hp] * jax.nn.sigmoid(z[:, Hp:])                     # GLU

    # output_projection (Linear); lane-dense bf16 store.
    out = jnp.dot(u2.astype(jnp.bfloat16), w_out_ref[...],
                  preferred_element_type=jnp.float32) + b_out_ref[...]
    o_ref[...] = out.reshape(Bt, L, Dp_out).astype(o_ref.dtype)


# ----------------------------------------------------------------------------
# Parameter-only glue (plain JAX, outside the kernel).
# ----------------------------------------------------------------------------
def _s4d_ssm_kernel(log_dt, log_A_real, A_imag, C_re, C_im, L):
    """Reproduces S4DKernel.forward(L) -> k of shape (H, L), in f32."""
    dt = jnp.exp(log_dt)                                      # (H,)
    A = -jnp.exp(log_A_real) + 1j * A_imag                    # (H, N/2)
    C = C_re + 1j * C_im                                      # (H, N/2)
    dtA = A * dt[:, None]
    K = dtA[:, :, None] * jnp.arange(L)                       # (H, N/2, L)
    C2 = C * (jnp.exp(dtA) - 1.0) / A
    k = 2.0 * jnp.real(jnp.einsum('hn,hnl->hl', C2, jnp.exp(K)))
    return k.astype(jnp.float32)                              # (H, L)


def _round_up(v, m):
    return -(-v // m) * m


def _pad_axis(a, size, axis):
    pad = size - a.shape[axis]
    if pad <= 0:
        return a
    widths = [(0, 0)] * a.ndim
    widths[axis] = (0, pad)
    return jnp.pad(a, widths)


def _prepare_params(params, L, Hp, Dp_out):
    """Pad channel dims to lane-dense 128 multiples, fuse the GLU halves, cast
    dense-matmul weights to bf16 and build the sublane-pre-shifted SSM-kernel
    bank used by the in-kernel causal convolution."""
    D_in, H = params['w_in'].shape
    D_out = params['w_out'].shape[1]
    NL = params['log_dt'].shape[0]

    w_in = _pad_axis(params['w_in'], Hp, 1).astype(jnp.bfloat16)          # (D_in, Hp)
    b_in = _pad_axis(params['b_in'].reshape(1, H), Hp, 1).astype(jnp.float32)
    w_out = _pad_axis(_pad_axis(params['w_out'], Hp, 0),
                      Dp_out, 1).astype(jnp.bfloat16)                     # (Hp, Dp_out)
    b_out = _pad_axis(params['b_out'].reshape(1, D_out), Dp_out, 1).astype(jnp.float32)

    # Kernel bank: per layer, 8 sublane-pre-shifted copies of the zero-extended
    # kernel kz = [zeros(L, Hp); k^T; zeros(8, Hp)], flattened to (8*2L, Hp) so
    # any per-tau (L, Hp) slice starts on an 8-row boundary inside the kernel.
    banks = []
    for l in range(NL):
        k = _s4d_ssm_kernel(params['log_dt'][l], params['log_A_real'][l],
                            params['A_imag'][l], params['C_re'][l],
                            params['C_im'][l], L)                          # (H, L)
        k_lh = _pad_axis(k.T, Hp, 1)                                       # (L, Hp)
        kz = jnp.concatenate([jnp.zeros((L, Hp), jnp.float32), k_lh,
                              jnp.zeros((SUBLANE, Hp), jnp.float32)], axis=0)
        banks.append(jnp.concatenate([kz[r:r + 2 * L] for r in range(SUBLANE)],
                                     axis=0))                              # (8*2L, Hp)
    bank = jnp.stack(banks, axis=0)                                        # (NL, 8*2L, Hp)

    d = _pad_axis(params['D'][:, None, :], Hp, 2).astype(jnp.float32)      # (NL, 1, Hp)

    # Fused GLU weight/bias: columns [0:Hp] = "a" half, [Hp:2Hp] = "b" half.
    cw = params['conv_w']                                                  # (NL, 2H, H)
    cb = params['conv_b']                                                  # (NL, 2H)
    wglu = jnp.zeros((NL, Hp, 2 * Hp), jnp.float32)
    wglu = wglu.at[:, :H, :H].set(jnp.transpose(cw[:, :H, :], (0, 2, 1)))
    wglu = wglu.at[:, :H, Hp:Hp + H].set(jnp.transpose(cw[:, H:, :], (0, 2, 1)))
    bglu = jnp.zeros((NL, 1, 2 * Hp), jnp.float32)
    bglu = bglu.at[:, 0, :H].set(cb[:, :H])
    bglu = bglu.at[:, 0, Hp:Hp + H].set(cb[:, H:])

    return dict(w_in=w_in, b_in=b_in, w_out=w_out, b_out=b_out,
                bank=bank, d=d, wglu=wglu.astype(jnp.bfloat16), bglu=bglu)


# ----------------------------------------------------------------------------
# Wrapper: tile sizing, specs, launch pallas_call.
# ----------------------------------------------------------------------------
def s4d_neuro_forward(x, params, *, target_rows=512,
                      vmem_limit_bytes=48 * 1024 * 1024):
    B, L, D_in = x.shape
    assert L % SUBLANE == 0, "sequence length must be a multiple of 8"
    H = params['w_in'].shape[1]
    D_out = params['w_out'].shape[1]
    NL = params['log_dt'].shape[0]

    Hp = _round_up(H, LANE)
    Dp_out = _round_up(D_out, LANE)
    p = _prepare_params(params, L, Hp, Dp_out)

    # -- batch tile: feed the MXU ~target_rows activation rows per grid step,
    #    keep >= 2 grid steps (v7x: 2 TCs on the "parallel" axis) and stay
    #    inside the VMEM budget (parameters are single-buffered below).
    def step_vmem_bytes(bt):
        m = bt * L
        act = 2 * m * D_in * 2 + 2 * m * Dp_out * 2        # double-buffered x / out (bf16)
        scr = 2 * bt * L * Hp * 4                          # u_scr + acc_scr
        live = 4 * m * 2 * Hp * 4                          # u2 / y2 / z / contrib headroom
        par = ((D_in * Hp + Hp * Dp_out + NL * Hp * 2 * Hp) * 2          # bf16 weights
               + (Hp + Dp_out + 3 * NL * Hp
                  + NL * SUBLANE * 2 * L * Hp) * 4)                      # f32 vectors + bank
        return act + scr + live + par

    Bt = max(1, min(B, max(1, target_rows // L)))
    if B >= 2:
        Bt = min(Bt, -(-B // 2))                           # keep >= 2 grid steps
    while Bt > 1 and step_vmem_bytes(Bt) > 0.75 * vmem_limit_bytes:
        Bt //= 2
    B_pad = _round_up(B, Bt)

    # x goes in as bf16 with its channel dim UNPADDED (block dim == array dim);
    # only the batch dim is padded up to a multiple of the tile.
    x_p = _pad_axis(x.astype(jnp.bfloat16), B_pad, 0)

    # Advisory cost hint for XLA's scheduler around the custom call.
    m_tot = B_pad * L
    flops = (2 * m_tot * D_in * Hp
             + NL * (2 * m_tot * L * Hp + 2 * m_tot * Hp * 2 * Hp)
             + 2 * m_tot * Hp * Dp_out)
    transcendentals = NL * m_tot * 2 * Hp
    bytes_accessed = (int(x_p.size) * 2 + m_tot * Dp_out * 2
                      + sum(int(v.size) * v.dtype.itemsize for v in p.values()))

    pin = pl.Buffered(1)   # grid-invariant parameters: single-buffered, no refetch
    grid = (B_pad // Bt,)
    out = pl.pallas_call(
        _s4d_neuro_kernel,
        out_shape=jax.ShapeDtypeStruct((B_pad, L, Dp_out), jnp.bfloat16),
        grid=grid,
        in_specs=[
            pl.BlockSpec((Bt, L, D_in), lambda b: (b, 0, 0)),                       # x (bf16)
            pl.BlockSpec((D_in, Hp), lambda b: (0, 0), pipeline_mode=pin),          # w_in
            pl.BlockSpec((1, Hp), lambda b: (0, 0), pipeline_mode=pin),             # b_in
            pl.BlockSpec((NL, SUBLANE * 2 * L, Hp), lambda b: (0, 0, 0),
                         pipeline_mode=pin),                                        # kernel bank
            pl.BlockSpec((NL, 1, Hp), lambda b: (0, 0, 0), pipeline_mode=pin),      # D skip
            pl.BlockSpec((NL, Hp, 2 * Hp), lambda b: (0, 0, 0), pipeline_mode=pin), # fused GLU w
            pl.BlockSpec((NL, 1, 2 * Hp), lambda b: (0, 0, 0), pipeline_mode=pin),  # fused GLU b
            pl.BlockSpec((Hp, Dp_out), lambda b: (0, 0), pipeline_mode=pin),        # w_out
            pl.BlockSpec((1, Dp_out), lambda b: (0, 0), pipeline_mode=pin),         # b_out
        ],
        out_specs=pl.BlockSpec((Bt, L, Dp_out), lambda b: (b, 0, 0)),       # lane-dense bf16
        scratch_shapes=[pltpu.VMEM((Bt, L, Hp), jnp.float32),               # u_scr
                        pltpu.VMEM((Bt, L, Hp), jnp.float32)],              # acc_scr
        compiler_params=pltpu.CompilerParams(
            dimension_semantics=("parallel",),          # batch tiles across TCs (v7x)
            vmem_limit_bytes=vmem_limit_bytes),
        cost_estimate=pl.CostEstimate(flops=int(flops),
                                      transcendentals=int(transcendentals),
                                      bytes_accessed=int(bytes_accessed)),
    )(x_p, p['w_in'], p['b_in'], p['bank'], p['d'],
      p['wglu'], p['bglu'], p['w_out'], p['b_out'])

    return out[:B, :, :D_out].astype(jnp.float32)


# ----------------------------------------------------------------------------
# Pure-JAX f32 reference (matches the PyTorch module in eval mode; exact GELU).
# ----------------------------------------------------------------------------
def _s4d_neuro_reference(x, params):
    B, L, _ = x.shape
    NL, H = params['D'].shape
    u = x @ params['w_in'] + params['b_in']                              # (B, L, H)
    for l in range(NL):
        k = _s4d_ssm_kernel(params['log_dt'][l], params['log_A_real'][l],
                            params['A_imag'][l], params['C_re'][l],
                            params['C_im'][l], L)                        # (H, L)
        y = u * params['D'][l]
        for tau in range(L):
            kz = jnp.concatenate(
                [jnp.zeros((H, tau), jnp.float32), k[:, :L - tau]], axis=1)
            y = y + kz.T[None] * u[:, tau:tau + 1, :]
        y = 0.5 * y * (1.0 + lax.erf(y / math.sqrt(2.0)))
        a = y @ params['conv_w'][l, :H, :].T + params['conv_b'][l, :H]
        b = y @ params['conv_w'][l, H:, :].T + params['conv_b'][l, H:]
        u = a * jax.nn.sigmoid(b)
    return u @ params['w_out'] + params['b_out']


# ----------------------------------------------------------------------------
# Deterministic synthetic parameter initialization (shapes from __init__).
# ----------------------------------------------------------------------------
def init_params(key, input_dim, output_dim, d_state, hidden_dim, num_layers=NUM_LAYERS):
    H, N2, NL = hidden_dim, d_state // 2, num_layers
    ks = jax.random.split(key, 10)

    def uni(k, shape, fan_in):
        bound = 1.0 / math.sqrt(fan_in)
        return jax.random.uniform(k, shape, jnp.float32, -bound, bound)

    return {
        # Linear(input_dim, H): stored pre-transposed as (D_in, H)
        'w_in':  uni(ks[0], (input_dim, H), input_dim),
        'b_in':  uni(ks[1], (H,), input_dim),
        # Linear(H, output_dim): stored as (H, D_out)
        'w_out': uni(ks[2], (H, output_dim), H),
        'b_out': uni(ks[3], (output_dim,), H),
        # Per-layer S4D parameters (stacked over layers)
        'log_dt': (jax.random.uniform(ks[4], (NL, H), jnp.float32)
                   * (math.log(DT_MAX) - math.log(DT_MIN)) + math.log(DT_MIN)),
        'log_A_real': jnp.full((NL, H, N2), math.log(0.5), jnp.float32),
        'A_imag': jnp.broadcast_to(math.pi * jnp.arange(N2, dtype=jnp.float32),
                                   (NL, H, N2)),
        'C_re': jax.random.normal(ks[5], (NL, H, N2), jnp.float32) * math.sqrt(0.5),
        'C_im': jax.random.normal(ks[6], (NL, H, N2), jnp.float32) * math.sqrt(0.5),
        'D':    jax.random.normal(ks[7], (NL, H), jnp.float32),
        # Conv1d(H, 2H, kernel_size=1): weight (2H, H), bias (2H,)
        'conv_w': uni(ks[8], (NL, 2 * H, H), H),
        'conv_b': uni(ks[9], (NL, 2 * H), H),
    }


if __name__ == "__main__":
    B, L = 4, 16
    input_dim, output_dim = 8, 4
    hidden_dim, d_state = 32, 16

    key = jax.random.PRNGKey(0)
    kx, kp = jax.random.split(key)
    neural_input = jax.random.normal(kx, (B, L, input_dim), dtype=jnp.float32)
    params = init_params(kp, input_dim, output_dim, d_state, hidden_dim)

    out = s4d_neuro_forward(neural_input, params)
    out = jax.block_until_ready(out)
    assert out.shape == (B, L, output_dim)
    assert bool(jnp.all(jnp.isfinite(out)))

    # Loose tolerance vs. the f32/erf reference (kernel uses bf16 matmul
    # operands and tanh-approx GELU).
    ref = _s4d_neuro_reference(neural_input, params)
    err = float(jnp.max(jnp.abs(out - ref)))
    tol = 5e-2 + 5e-2 * float(jnp.max(jnp.abs(ref)))
    assert err < tol, f"kernel deviates from reference: max|diff|={err} tol={tol}"

    print("KERNEL_OK")
</pallas_src>

<mosaic_0001>
module attributes {stable_mosaic.version = 11 : i64} {
  func.func @_s4d_neuro_kernel(%arg0: i32, %arg1: memref<2x16x8xbf16, #tpu.memory_space<vmem>>, %arg2: memref<8x128xbf16, #tpu.memory_space<vmem>>, %arg3: memref<1x128xf32, #tpu.memory_space<vmem>>, %arg4: memref<2x256x128xf32, #tpu.memory_space<vmem>>, %arg5: memref<2x1x128xf32, #tpu.memory_space<vmem>>, %arg6: memref<2x128x256xbf16, #tpu.memory_space<vmem>>, %arg7: memref<2x1x256xf32, #tpu.memory_space<vmem>>, %arg8: memref<128x128xbf16, #tpu.memory_space<vmem>>, %arg9: memref<1x128xf32, #tpu.memory_space<vmem>>, %arg10: memref<2x16x128xbf16, #tpu.memory_space<vmem>>, %arg11: memref<2x16x128xf32, #tpu.memory_space<vmem>>, %arg12: memref<2x16x128xf32, #tpu.memory_space<vmem>>) attributes {dimension_semantics = [#tpu.dimension_semantics<parallel>], iteration_bounds = array<i64: 2>, scalar_prefetch = 0 : i64, scratch_operands = 2 : i64, tpu.core_type = #tpu.core_type<tc>, window_params = [{transform_indices = @transform_0, window_bounds = array<i64: 2, 16, 8>}, {pipeline_mode = #tpu.pipeline_mode<synchronous>, transform_indices = @transform_1, window_bounds = array<i64: 8, 128>}, {pipeline_mode = #tpu.pipeline_mode<synchronous>, transform_indices = @transform_2, window_bounds = array<i64: 1, 128>}, {pipeline_mode = #tpu.pipeline_mode<synchronous>, transform_indices = @transform_3, window_bounds = array<i64: 2, 256, 128>}, {pipeline_mode = #tpu.pipeline_mode<synchronous>, transform_indices = @transform_4, window_bounds = array<i64: 2, 1, 128>}, {pipeline_mode = #tpu.pipeline_mode<synchronous>, transform_indices = @transform_5, window_bounds = array<i64: 2, 128, 256>}, {pipeline_mode = #tpu.pipeline_mode<synchronous>, transform_indices = @transform_6, window_bounds = array<i64: 2, 1, 256>}, {pipeline_mode = #tpu.pipeline_mode<synchronous>, transform_indices = @transform_7, window_bounds = array<i64: 128, 128>}, {pipeline_mode = #tpu.pipeline_mode<synchronous>, transform_indices = @transform_8, window_bounds = array<i64: 1, 128>}, {transform_indices = @transform_9, window_bounds = array<i64: 2, 16, 128>}]} {
    %c0 = arith.constant 0 : index
    %c0_0 = arith.constant 0 : index
    %c0_1 = arith.constant 0 : index
    %0 = vector.load %arg1[%c0, %c0_0, %c0_1] : memref<2x16x8xbf16, #tpu.memory_space<vmem>>, vector<2x16x8xbf16>
    %1 = vector.shape_cast %0 : vector<2x16x8xbf16> to vector<32x8xbf16>
    %c0_2 = arith.constant 0 : index
    %c0_3 = arith.constant 0 : index
    %2 = vector.load %arg2[%c0_2, %c0_3] : memref<8x128xbf16, #tpu.memory_space<vmem>>, vector<8x128xbf16>
    %cst = arith.constant dense<0.000000e+00> : vector<32x128xf32>
    %3 = tpu.matmul %1, %2, %cst {dimension_numbers = #tpu.dot_dimension_numbers<[1], [0], [0], [1], [0, 0, 1, 1], [], []>} : vector<32x8xbf16>, vector<8x128xbf16>, vector<32x128xf32> -> vector<32x128xf32>
    %c0_4 = arith.constant 0 : index
    %c0_5 = arith.constant 0 : index
    %4 = vector.load %arg3[%c0_4, %c0_5] : memref<1x128xf32, #tpu.memory_space<vmem>>, vector<1x128xf32>
    %5 = vector.broadcast %4 : vector<1x128xf32> to vector<32x128xf32>
    %6 = arith.addf %3, %5 : vector<32x128xf32>
    %7 = vector.shape_cast %6 : vector<32x128xf32> to vector<2x16x128xf32>
    %c0_6 = arith.constant 0 : index
    %c0_7 = arith.constant 0 : index
    %c0_8 = arith.constant 0 : index
    %8 = vector.load %arg11[%c0_6, %c0_7, %c0_8] : memref<2x16x128xf32, #tpu.memory_space<vmem>>, vector<2x16x128xf32>
    tpu.vector_store %arg11[%c0_6, %c0_7, %c0_8], %7 {strides = array<i32>} : memref<2x16x128xf32, #tpu.memory_space<vmem>>, vector<2x16x128xf32>,
    %c0_9 = arith.constant 0 : index
    %c0_10 = arith.constant 0 : index
    %c0_11 = arith.constant 0 : index
    %9 = vector.load %arg5[%c0_9, %c0_10, %c0_11] : memref<2x1x128xf32, #tpu.memory_space<vmem>>, vector<1x1x128xf32>
    %10 = vector.shape_cast %9 : vector<1x1x128xf32> to vector<1x128xf32>
    %11 = vector.shape_cast %10 : vector<1x128xf32> to vector<1x1x128xf32>
    %12 = vector.broadcast %11 : vector<1x1x128xf32> to vector<2x16x128xf32>
    %13 = arith.mulf %7, %12 : vector<2x16x128xf32>
    %c0_12 = arith.constant 0 : index
    %c0_13 = arith.constant 0 : index
    %c0_14 = arith.constant 0 : index
    %14 = vector.load %arg12[%c0_12, %c0_13, %c0_14] : memref<2x16x128xf32, #tpu.memory_space<vmem>>, vector<2x16x128xf32>
    tpu.vector_store %arg12[%c0_12, %c0_13, %c0_14], %13 {strides = array<i32>} : memref<2x16x128xf32, #tpu.memory_space<vmem>>, vector<2x16x128xf32>,
    %c0_i32 = arith.constant 0 : i32
    %c0_i32_15 = arith.constant 0 : i32
    %c2_i32 = arith.constant 2 : i32
    %15 = arith.addi %c0_i32_15, %c2_i32 : i32
    %c1_i32 = arith.constant 1 : i32
    scf.for %arg13 = %c0_i32_15 to %15 step %c1_i32  : i32 {
      %c8_i32 = arith.constant 8 : i32
      %96 = arith.muli %c8_i32, %arg13 : i32
      %97 = tpu.assume_multiple %96, 8 : i32
      %c0_68 = arith.constant 0 : index
      %98 = arith.index_cast %97 : i32 to index
      %c0_69 = arith.constant 0 : index
      %99 = vector.load %arg11[%c0_68, %98, %c0_69] : memref<2x16x128xf32, #tpu.memory_space<vmem>>, vector<2x8x128xf32>
      %c8_i32_70 = arith.constant 8 : i32
      %100 = arith.muli %c8_i32_70, %arg13 : i32
      %c16_i32 = arith.constant 16 : i32
      %101 = arith.subi %c16_i32, %100 : i32
      %c0_i32_71 = arith.constant 0 : i32
      %102 = arith.addi %c0_i32_71, %101 : i32
      %c0_i32_72 = arith.constant 0 : i32
      %103 = arith.subi %102, %c0_i32_72 : i32
      %104 = tpu.assume_multiple %103, 8 : i32
      %c0_i32_73 = arith.constant 0 : i32
      %c0_i32_74 = arith.constant 0 : i32
      %105 = tpu.memref_slice %arg4[%c0_i32, %c0_i32_73, %c0_i32_74] : memref<2x256x128xf32, #tpu.memory_space<vmem>> -> memref<1x256x128xf32, #tpu.memory_space<vmem>>
      %106 = tpu.memref_squeeze %105 : memref<1x256x128xf32, #tpu.memory_space<vmem>> -> memref<256x128xf32, #tpu.memory_space<vmem>>
      %107 = arith.index_cast %104 : i32 to index
      %c0_75 = arith.constant 0 : index
      %108 = vector.load %106[%107, %c0_75] : memref<256x128xf32, #tpu.memory_space<vmem>>, vector<16x128xf32>
      %109 = vector.shape_cast %108 : vector<16x128xf32> to vector<1x16x128xf32>
      %110 = vector.extract_strided_slice %99 {offsets = [0, 0, 0], sizes = [2, 1, 128], strides = [1, 1, 1]} : vector<2x8x128xf32> to vector<2x1x128xf32>
      %111 = vector.broadcast %109 : vector<1x16x128xf32> to vector<2x16x128xf32>
      %112 = vector.broadcast %110 : vector<2x1x128xf32> to vector<2x16x128xf32>
      %113 = arith.mulf %111, %112 : vector<2x16x128xf32>
      %c224_i32 = arith.constant 224 : i32
      %114 = arith.addi %c224_i32, %101 : i32
      %c8_i32_76 = arith.constant 8 : i32
      %115 = arith.subi %114, %c8_i32_76 : i32
      %116 = tpu.assume_multiple %115, 8 : i32
      %c0_i32_77 = arith.constant 0 : i32
      %c0_i32_78 = arith.constant 0 : i32
      %117 = tpu.memref_slice %arg4[%c0_i32, %c0_i32_77, %c0_i32_78] : memref<2x256x128xf32, #tpu.memory_space<vmem>> -> memref<1x256x128xf32, #tpu.memory_space<vmem>>
      %118 = tpu.memref_squeeze %117 : memref<1x256x128xf32, #tpu.memory_space<vmem>> -> memref<256x128xf32, #tpu.memory_space<vmem>>
      %119 = arith.index_cast %116 : i32 to index
      %c0_79 = arith.constant 0 : index
      %120 = vector.load %118[%119, %c0_79] : memref<256x128xf32, #tpu.memory_space<vmem>>, vector<16x128xf32>
      %121 = vector.shape_cast %120 : vector<16x128xf32> to vector<1x16x128xf32>
      %122 = vector.extract_strided_slice %99 {offsets = [0, 1, 0], sizes = [2, 1, 128], strides = [1, 1, 1]} : vector<2x8x128xf32> to vector<2x1x128xf32>
      %123 = vector.broadcast %121 : vector<1x16x128xf32> to vector<2x16x128xf32>
      %124 = vector.broadcast %122 : vector<2x1x128xf32> to vector<2x16x128xf32>
      %125 = arith.mulf %123, %124 : vector<2x16x128xf32>
      %126 = arith.addf %113, %125 : vector<2x16x128xf32>
      %c192_i32 = arith.constant 192 : i32
      %127 = arith.addi %c192_i32, %101 : i32
      %c8_i32_80 = arith.constant 8 : i32
      %128 = arith.subi %127, %c8_i32_80 : i32
      %129 = tpu.assume_multiple %128, 8 : i32
      %c0_i32_81 = arith.constant 0 : i32
      %c0_i32_82 = arith.constant 0 : i32
      %130 = tpu.memref_slice %arg4[%c0_i32, %c0_i32_81, %c0_i32_82] : memref<2x256x128xf32, #tpu.memory_space<vmem>> -> memref<1x256x128xf32, #tpu.memory_space<vmem>>
      %131 = tpu.memref_squeeze %130 : memref<1x256x128xf32, #tpu.memory_space<vmem>> -> memref<256x128xf32, #tpu.memory_space<vmem>>
      %132 = arith.index_cast %129 : i32 to index
      %c0_83 = arith.constant 0 : index
      %133 = vector.load %131[%132, %c0_83] : memref<256x128xf32, #tpu.memory_space<vmem>>, vector<16x128xf32>
      %134 = vector.shape_cast %133 : vector<16x128xf32> to vector<1x16x128xf32>
      %135 = vector.extract_strided_slice %99 {offsets = [0, 2, 0], sizes = [2, 1, 128], strides = [1, 1, 1]} : vector<2x8x128xf32> to vector<2x1x128xf32>
      %136 = vector.broadcast %134 : vector<1x16x128xf32> to vector<2x16x128xf32>
      %137 = vector.broadcast %135 : vector<2x1x128xf32> to vector<2x16x128xf32>
      %138 = arith.mulf %136, %137 : vector<2x16x128xf32>
      %139 = arith.addf %126, %138 : vector<2x16x128xf32>
      %c160_i32 = arith.constant 160 : i32
      %140 = arith.addi %c160_i32, %101 : i32
      %c8_i32_84 = arith.constant 8 : i32
      %141 = arith.subi %140, %c8_i32_84 : i32
      %142 = tpu.assume_multiple %141, 8 : i32
      %c0_i32_85 = arith.constant 0 : i32
      %c0_i32_86 = arith.constant 0 : i32
      %143 = tpu.memref_slice %arg4[%c0_i32, %c0_i32_85, %c0_i32_86] : memref<2x256x128xf32, #tpu.memory_space<vmem>> -> memref<1x256x128xf32, #tpu.memory_space<vmem>>
      %144 = tpu.memref_squeeze %143 : memref<1x256x128xf32, #tpu.memory_space<vmem>> -> memref<256x128xf32, #tpu.memory_space<vmem>>
      %145 = arith.index_cast %142 : i32 to index
      %c0_87 = arith.constant 0 : index
      %146 = vector.load %144[%145, %c0_87] : memref<256x128xf32, #tpu.memory_space<vmem>>, vector<16x128xf32>
      %147 = vector.shape_cast %146 : vector<16x128xf32> to vector<1x16x128xf32>
      %148 = vector.extract_strided_slice %99 {offsets = [0, 3, 0], sizes = [2, 1, 128], strides = [1, 1, 1]} : vector<2x8x128xf32> to vector<2x1x128xf32>
      %149 = vector.broadcast %147 : vector<1x16x128xf32> to vector<2x16x128xf32>
      %150 = vector.broadcast %148 : vector<2x1x128xf32> to vector<2x16x128xf32>
      %151 = arith.mulf %149, %150 : vector<2x16x128xf32>
      %152 = arith.addf %139, %151 : vector<2x16x128xf32>
      %c128_i32 = arith.constant 128 : i32
      %153 = arith.addi %c128_i32, %101 : i32
      %c8_i32_88 = arith.constant 8 : i32
      %154 = arith.subi %153, %c8_i32_88 : i32
      %155 = tpu.assume_multiple %154, 8 : i32
      %c0_i32_89 = arith.constant 0 : i32
      %c0_i32_90 = arith.constant 0 : i32
      %156 = tpu.memref_slice %arg4[%c0_i32, %c0_i32_89, %c0_i32_90] : memref<2x256x128xf32, #tpu.memory_space<vmem>> -> memref<1x256x128xf32, #tpu.memory_space<vmem>>
      %157 = tpu.memref_squeeze %156 : memref<1x256x128xf32, #tpu.memory_space<vmem>> -> memref<256x128xf32, #tpu.memory_space<vmem>>
      %158 = arith.index_cast %155 : i32 to index
      %c0_91 = arith.constant 0 : index
      %159 = vector.load %157[%158, %c0_91] : memref<256x128xf32, #tpu.memory_space<vmem>>, vector<16x128xf32>
      %160 = vector.shape_cast %159 : vector<16x128xf32> to vector<1x16x128xf32>
      %161 = vector.extract_strided_slice %99 {offsets = [0, 4, 0], sizes = [2, 1, 128], strides = [1, 1, 1]} : vector<2x8x128xf32> to vector<2x1x128xf32>
      %162 = vector.broadcast %160 : vector<1x16x128xf32> to vector<2x16x128xf32>
      %163 = vector.broadcast %161 : vector<2x1x128xf32> to vector<2x16x128xf32>
      %164 = arith.mulf %162, %163 : vector<2x16x128xf32>
      %165 = arith.addf %152, %164 : vector<2x16x128xf32>
      %c96_i32 = arith.constant 96 : i32
      %166 = arith.addi %c96_i32, %101 : i32
      %c8_i32_92 = arith.constant 8 : i32
      %167 = arith.subi %166, %c8_i32_92 : i32
      %168 = tpu.assume_multiple %167, 8 : i32
      %c0_i32_93 = arith.constant 0 : i32
      %c0_i32_94 = arith.constant 0 : i32
      %169 = tpu.memref_slice %arg4[%c0_i32, %c0_i32_93, %c0_i32_94] : memref<2x256x128xf32, #tpu.memory_space<vmem>> -> memref<1x256x128xf32, #tpu.memory_space<vmem>>
      %170 = tpu.memref_squeeze %169 : memref<1x256x128xf32, #tpu.memory_space<vmem>> -> memref<256x128xf32, #tpu.memory_space<vmem>>
      %171 = arith.index_cast %168 : i32 to index
      %c0_95 = arith.constant 0 : index
      %172 = vector.load %170[%171, %c0_95] : memref<256x128xf32, #tpu.memory_space<vmem>>, vector<16x128xf32>
      %173 = vector.shape_cast %172 : vector<16x128xf32> to vector<1x16x128xf32>
      %174 = vector.extract_strided_slice %99 {offsets = [0, 5, 0], sizes = [2, 1, 128], strides = [1, 1, 1]} : vector<2x8x128xf32> to vector<2x1x128xf32>
      %175 = vector.broadcast %173 : vector<1x16x128xf32> to vector<2x16x128xf32>
      %176 = vector.broadcast %174 : vector<2x1x128xf32> to vector<2x16x128xf32>
      %177 = arith.mulf %175, %176 : vector<2x16x128xf32>
      %178 = arith.addf %165, %177 : vector<2x16x128xf32>
      %c64_i32 = arith.constant 64 : i32
      %179 = arith.addi %c64_i32, %101 : i32
      %c8_i32_96 = arith.constant 8 : i32
      %180 = arith.subi %179, %c8_i32_96 : i32
      %181 = tpu.assume_multiple %180, 8 : i32
      %c0_i32_97 = arith.constant 0 : i32
      %c0_i32_98 = arith.constant 0 : i32
      %182 = tpu.memref_slice %arg4[%c0_i32, %c0_i32_97, %c0_i32_98] : memref<2x256x128xf32, #tpu.memory_space<vmem>> -> memref<1x256x128xf32, #tpu.memory_space<vmem>>
      %183 = tpu.memref_squeeze %182 : memref<1x256x128xf32, #tpu.memory_space<vmem>> -> memref<256x128xf32, #tpu.memory_space<vmem>>
      %184 = arith.index_cast %181 : i32 to index
      %c0_99 = arith.constant 0 : index
      %185 = vector.load %183[%184, %c0_99] : memref<256x128xf32, #tpu.memory_space<vmem>>, vector<16x128xf32>
      %186 = vector.shape_cast %185 : vector<16x128xf32> to vector<1x16x128xf32>
      %187 = vector.extract_strided_slice %99 {offsets = [0, 6, 0], sizes = [2, 1, 128], strides = [1, 1, 1]} : vector<2x8x128xf32> to vector<2x1x128xf32>
      %188 = vector.broadcast %186 : vector<1x16x128xf32> to vector<2x16x128xf32>
      %189 = vector.broadcast %187 : vector<2x1x128xf32> to vector<2x16x128xf32>
      %190 = arith.mulf %188, %189 : vector<2x16x128xf32>
      %191 = arith.addf %178, %190 : vector<2x16x128xf32>
      %c32_i32 = arith.constant 32 : i32
      %192 = arith.addi %c32_i32, %101 : i32
      %c8_i32_100 = arith.constant 8 : i32
      %193 = arith.subi %192, %c8_i32_100 : i32
      %194 = tpu.assume_multiple %193, 8 : i32
      %c0_i32_101 = arith.constant 0 : i32
      %c0_i32_102 = arith.constant 0 : i32
      %195 = tpu.memref_slice %arg4[%c0_i32, %c0_i32_101, %c0_i32_102] : memref<2x256x128xf32, #tpu.memory_space<vmem>> -> memref<1x256x128xf32, #tpu.memory_space<vmem>>
      %196 = tpu.memref_squeeze %195 : memref<1x256x128xf32, #tpu.memory_space<vmem>> -> memref<256x128xf32, #tpu.memory_space<vmem>>
      %197 = arith.index_cast %194 : i32 to index
      %c0_103 = arith.constant 0 : index
      %198 = vector.load %196[%197, %c0_103] : memref<256x128xf32, #tpu.memory_space<vmem>>, vector<16x128xf32>
      %199 = vector.shape_cast %198 : vector<16x128xf32> to vector<1x16x128xf32>
      %200 = vector.extract_strided_slice %99 {offsets = [0, 7, 0], sizes = [2, 1, 128], strides = [1, 1, 1]} : vector<2x8x128xf32> to vector<2x1x128xf32>
      %201 = vector.broadcast %199 : vector<1x16x128xf32> to vector<2x16x128xf32>
      %202 = vector.broadcast %200 : vector<2x1x128xf32> to vector<2x16x128xf32>
      %203 = arith.mulf %201, %202 : vector<2x16x128xf32>
      %204 = arith.addf %191, %203 : vector<2x16x128xf32>
      %c0_104 = arith.constant 0 : index
      %c0_105 = arith.constant 0 : index
      %c0_106 = arith.constant 0 : index
      %205 = vector.load %arg12[%c0_104, %c0_105, %c0_106] : memref<2x16x128xf32, #tpu.memory_space<vmem>>, vector<2x16x128xf32>
      %206 = arith.addf %205, %204 : vector<2x16x128xf32>
      %c0_107 = arith.constant 0 : index
      %c0_108 = arith.constant 0 : index
      %c0_109 = arith.constant 0 : index
      %207 = vector.load %arg12[%c0_107, %c0_108, %c0_109] : memref<2x16x128xf32, #tpu.memory_space<vmem>>, vector<2x16x128xf32>
      tpu.vector_store %arg12[%c0_107, %c0_108, %c0_109], %206 {strides = array<i32>} : memref<2x16x128xf32, #tpu.memory_space<vmem>>, vector<2x16x128xf32>,
    }
    %c2_i32_16 = arith.constant 2 : i32
    %c0_17 = arith.constant 0 : index
    %c0_18 = arith.constant 0 : index
    %c0_19 = arith.constant 0 : index
    %16 = vector.load %arg12[%c0_17, %c0_18, %c0_19] : memref<2x16x128xf32, #tpu.memory_space<vmem>>, vector<2x16x128xf32>
    %17 = vector.shape_cast %16 : vector<2x16x128xf32> to vector<32x128xf32>
    %18 = arith.mulf %17, %17 : vector<32x128xf32>
    %19 = arith.mulf %17, %18 : vector<32x128xf32>
    %cst_20 = arith.constant 4.471500e-02 : f32
    %20 = vector.broadcast %cst_20 : f32 to vector<32x128xf32>
    %21 = arith.mulf %20, %19 : vector<32x128xf32>
    %22 = arith.addf %17, %21 : vector<32x128xf32>
    %cst_21 = arith.constant 0.797884583 : f32
    %23 = vector.broadcast %cst_21 : f32 to vector<32x128xf32>
    %24 = arith.mulf %23, %22 : vector<32x128xf32>
    %25 = math.tanh %24 : vector<32x128xf32>
    %cst_22 = arith.constant 1.000000e+00 : f32
    %26 = vector.broadcast %cst_22 : f32 to vector<32x128xf32>
    %27 = arith.addf %26, %25 : vector<32x128xf32>
    %cst_23 = arith.constant 5.000000e-01 : f32
    %28 = vector.broadcast %cst_23 : f32 to vector<32x128xf32>
    %29 = arith.mulf %28, %27 : vector<32x128xf32>
    %30 = arith.mulf %17, %29 : vector<32x128xf32>
    %31 = arith.truncf %30 : vector<32x128xf32> to vector<32x128xbf16>
    %c0_24 = arith.constant 0 : index
    %c0_25 = arith.constant 0 : index
    %c0_26 = arith.constant 0 : index
    %32 = vector.load %arg6[%c0_24, %c0_25, %c0_26] : memref<2x128x256xbf16, #tpu.memory_space<vmem>>, vector<1x128x256xbf16>
    %33 = vector.shape_cast %32 : vector<1x128x256xbf16> to vector<128x256xbf16>
    %cst_27 = arith.constant dense<0.000000e+00> : vector<32x256xf32>
    %34 = tpu.matmul %31, %33, %cst_27 {dimension_numbers = #tpu.dot_dimension_numbers<[1], [0], [0], [1], [0, 0, 1, 1], [], []>} : vector<32x128xbf16>, vector<128x256xbf16>, vector<32x256xf32> -> vector<32x256xf32>
    %c0_28 = arith.constant 0 : index
    %c0_29 = arith.constant 0 : index
    %c0_30 = arith.constant 0 : index
    %35 = vector.load %arg7[%c0_28, %c0_29, %c0_30] : memref<2x1x256xf32, #tpu.memory_space<vmem>>, vector<1x1x256xf32>
    %36 = vector.shape_cast %35 : vector<1x1x256xf32> to vector<1x256xf32>
    %37 = vector.broadcast %36 : vector<1x256xf32> to vector<32x256xf32>
    %38 = arith.addf %34, %37 : vector<32x256xf32>
    %39 = vector.extract_strided_slice %38 {offsets = [0, 0], sizes = [32, 128], strides = [1, 1]} : vector<32x256xf32> to vector<32x128xf32>
    %40 = vector.extract_strided_slice %38 {offsets = [0, 128], sizes = [32, 128], strides = [1, 1]} : vector<32x256xf32> to vector<32x128xf32>
    %41 = arith.negf %40 : vector<32x128xf32>
    %42 = math.exp %41 : vector<32x128xf32>
    %cst_31 = arith.constant 1.000000e+00 : f32
    %43 = vector.broadcast %cst_31 : f32 to vector<32x128xf32>
    %44 = arith.addf %43, %42 : vector<32x128xf32>
    %45 = arith.divf %43, %44 : vector<32x128xf32>
    %46 = arith.mulf %39, %45 : vector<32x128xf32>
    %47 = vector.shape_cast %46 : vector<32x128xf32> to vector<2x16x128xf32>
    %c0_32 = arith.constant 0 : index
    %c0_33 = arith.constant 0 : index
    %c0_34 = arith.constant 0 : index
    %48 = vector.load %arg11[%c0_32, %c0_33, %c0_34] : memref<2x16x128xf32, #tpu.memory_space<vmem>>, vector<2x16x128xf32>
    tpu.vector_store %arg11[%c0_32, %c0_33, %c0_34], %47 {strides = array<i32>} : memref<2x16x128xf32, #tpu.memory_space<vmem>>, vector<2x16x128xf32>,
    %c1 = arith.constant 1 : index
    %c0_35 = arith.constant 0 : index
    %c0_36 = arith.constant 0 : index
    %49 = vector.load %arg5[%c1, %c0_35, %c0_36] : memref<2x1x128xf32, #tpu.memory_space<vmem>>, vector<1x1x128xf32>
    %50 = vector.shape_cast %49 : vector<1x1x128xf32> to vector<1x128xf32>
    %51 = vector.shape_cast %50 : vector<1x128xf32> to vector<1x1x128xf32>
    %52 = vector.broadcast %51 : vector<1x1x128xf32> to vector<2x16x128xf32>
    %53 = arith.mulf %47, %52 : vector<2x16x128xf32>
    %c0_37 = arith.constant 0 : index
    %c0_38 = arith.constant 0 : index
    %c0_39 = arith.constant 0 : index
    %54 = vector.load %arg12[%c0_37, %c0_38, %c0_39] : memref<2x16x128xf32, #tpu.memory_space<vmem>>, vector<2x16x128xf32>
    tpu.vector_store %arg12[%c0_37, %c0_38, %c0_39], %53 {strides = array<i32>} : memref<2x16x128xf32, #tpu.memory_space<vmem>>, vector<2x16x128xf32>,
    %c1_i32_40 = arith.constant 1 : i32
    %c0_i32_41 = arith.constant 0 : i32
    %c2_i32_42 = arith.constant 2 : i32
    %55 = arith.addi %c0_i32_41, %c2_i32_42 : i32
    %c1_i32_43 = arith.constant 1 : i32
    scf.for %arg13 = %c0_i32_41 to %55 step %c1_i32_43  : i32 {
      %c8_i32 = arith.constant 8 : i32
      %96 = arith.muli %c8_i32, %arg13 : i32
      %97 = tpu.assume_multiple %96, 8 : i32
      %c0_68 = arith.constant 0 : index
      %98 = arith.index_cast %97 : i32 to index
      %c0_69 = arith.constant 0 : index
      %99 = vector.load %arg11[%c0_68, %98, %c0_69] : memref<2x16x128xf32, #tpu.memory_space<vmem>>, vector<2x8x128xf32>
      %c8_i32_70 = arith.constant 8 : i32
      %100 = arith.muli %c8_i32_70, %arg13 : i32
      %c16_i32 = arith.constant 16 : i32
      %101 = arith.subi %c16_i32, %100 : i32
      %c0_i32_71 = arith.constant 0 : i32
      %102 = arith.addi %c0_i32_71, %101 : i32
      %c0_i32_72 = arith.constant 0 : i32
      %103 = arith.subi %102, %c0_i32_72 : i32
      %104 = tpu.assume_multiple %103, 8 : i32
      %c0_i32_73 = arith.constant 0 : i32
      %c0_i32_74 = arith.constant 0 : i32
      %105 = tpu.memref_slice %arg4[%c1_i32_40, %c0_i32_73, %c0_i32_74] : memref<2x256x128xf32, #tpu.memory_space<vmem>> -> memref<1x256x128xf32, #tpu.memory_space<vmem>>
      %106 = tpu.memref_squeeze %105 : memref<1x256x128xf32, #tpu.memory_space<vmem>> -> memref<256x128xf32, #tpu.memory_space<vmem>>
      %107 = arith.index_cast %104 : i32 to index
      %c0_75 = arith.constant 0 : index
      %108 = vector.load %106[%107, %c0_75] : memref<256x128xf32, #tpu.memory_space<vmem>>, vector<16x128xf32>
      %109 = vector.shape_cast %108 : vector<16x128xf32> to vector<1x16x128xf32>
      %110 = vector.extract_strided_slice %99 {offsets = [0, 0, 0], sizes = [2, 1, 128], strides = [1, 1, 1]} : vector<2x8x128xf32> to vector<2x1x128xf32>
      %111 = vector.broadcast %109 : vector<1x16x128xf32> to vector<2x16x128xf32>
      %112 = vector.broadcast %110 : vector<2x1x128xf32> to vector<2x16x128xf32>
      %113 = arith.mulf %111, %112 : vector<2x16x128xf32>
      %c224_i32 = arith.constant 224 : i32
      %114 = arith.addi %c224_i32, %101 : i32
      %c8_i32_76 = arith.constant 8 : i32
      %115 = arith.subi %114, %c8_i32_76 : i32
      %116 = tpu.assume_multiple %115, 8 : i32
      %c0_i32_77 = arith.constant 0 : i32
      %c0_i32_78 = arith.constant 0 : i32
      %117 = tpu.memref_slice %arg4[%c1_i32_40, %c0_i32_77, %c0_i32_78] : memref<2x256x128xf32, #tpu.memory_space<vmem>> -> memref<1x256x128xf32, #tpu.memory_space<vmem>>
      %118 = tpu.memref_squeeze %117 : memref<1x256x128xf32, #tpu.memory_space<vmem>> -> memref<256x128xf32, #tpu.memory_space<vmem>>
      %119 = arith.index_cast %116 : i32 to index
      %c0_79 = arith.constant 0 : index
      %120 = vector.load %118[%119, %c0_79] : memref<256x128xf32, #tpu.memory_space<vmem>>, vector<16x128xf32>
      %121 = vector.shape_cast %120 : vector<16x128xf32> to vector<1x16x128xf32>
      %122 = vector.extract_strided_slice %99 {offsets = [0, 1, 0], sizes = [2, 1, 128], strides = [1, 1, 1]} : vector<2x8x128xf32> to vector<2x1x128xf32>
      %123 = vector.broadcast %121 : vector<1x16x128xf32> to vector<2x16x128xf32>
      %124 = vector.broadcast %122 : vector<2x1x128xf32> to vector<2x16x128xf32>
      %125 = arith.mulf %123, %124 : vector<2x16x128xf32>
      %126 = arith.addf %113, %125 : vector<2x16x128xf32>
      %c192_i32 = arith.constant 192 : i32
      %127 = arith.addi %c192_i32, %101 : i32
      %c8_i32_80 = arith.constant 8 : i32
      %128 = arith.subi %127, %c8_i32_80 : i32
      %129 = tpu.assume_multiple %128, 8 : i32
      %c0_i32_81 = arith.constant 0 : i32
      %c0_i32_82 = arith.constant 0 : i32
      %130 = tpu.memref_slice %arg4[%c1_i32_40, %c0_i32_81, %c0_i32_82] : memref<2x256x128xf32, #tpu.memory_space<vmem>> -> memref<1x256x128xf32, #tpu.memory_space<vmem>>
      %131 = tpu.memref_squeeze %130 : memref<1x256x128xf32, #tpu.memory_space<vmem>> -> memref<256x128xf32, #tpu.memory_space<vmem>>
      %132 = arith.index_cast %129 : i32 to index
      %c0_83 = arith.constant 0 : index
      %133 = vector.load %131[%132, %c0_83] : memref<256x128xf32, #tpu.memory_space<vmem>>, vector<16x128xf32>
      %134 = vector.shape_cast %133 : vector<16x128xf32> to vector<1x16x128xf32>
      %135 = vector.extract_strided_slice %99 {offsets = [0, 2, 0], sizes = [2, 1, 128], strides = [1, 1, 1]} : vector<2x8x128xf32> to vector<2x1x128xf32>
      %136 = vector.broadcast %134 : vector<1x16x128xf32> to vector<2x16x128xf32>
      %137 = vector.broadcast %135 : vector<2x1x128xf32> to vector<2x16x128xf32>
      %138 = arith.mulf %136, %137 : vector<2x16x128xf32>
      %139 = arith.addf %126, %138 : vector<2x16x128xf32>
      %c160_i32 = arith.constant 160 : i32
      %140 = arith.addi %c160_i32, %101 : i32
      %c8_i32_84 = arith.constant 8 : i32
      %141 = arith.subi %140, %c8_i32_84 : i32
      %142 = tpu.assume_multiple %141, 8 : i32
      %c0_i32_85 = arith.constant 0 : i32
      %c0_i32_86 = arith.constant 0 : i32
      %143 = tpu.memref_slice %arg4[%c1_i32_40, %c0_i32_85, %c0_i32_86] : memref<2x256x128xf32, #tpu.memory_space<vmem>> -> memref<1x256x128xf32, #tpu.memory_space<vmem>>
      %144 = tpu.memref_squeeze %143 : memref<1x256x128xf32, #tpu.memory_space<vmem>> -> memref<256x128xf32, #tpu.memory_space<vmem>>
      %145 = arith.index_cast %142 : i32 to index
      %c0_87 = arith.constant 0 : index
      %146 = vector.load %144[%145, %c0_87] : memref<256x128xf32, #tpu.memory_space<vmem>>, vector<16x128xf32>
      %147 = vector.shape_cast %146 : vector<16x128xf32> to vector<1x16x128xf32>
      %148 = vector.extract_strided_slice %99 {offsets = [0, 3, 0], sizes = [2, 1, 128], strides = [1, 1, 1]} : vector<2x8x128xf32> to vector<2x1x128xf32>
      %149 = vector.broadcast %147 : vector<1x16x128xf32> to vector<2x16x128xf32>
      %150 = vector.broadcast %148 : vector<2x1x128xf32> to vector<2x16x128xf32>
      %151 = arith.mulf %149, %150 : vector<2x16x128xf32>
      %152 = arith.addf %139, %151 : vector<2x16x128xf32>
      %c128_i32 = arith.constant 128 : i32
      %153 = arith.addi %c128_i32, %101 : i32
      %c8_i32_88 = arith.constant 8 : i32
      %154 = arith.subi %153, %c8_i32_88 : i32
      %155 = tpu.assume_multiple %154, 8 : i32
      %c0_i32_89 = arith.constant 0 : i32
      %c0_i32_90 = arith.constant 0 : i32
      %156 = tpu.memref_slice %arg4[%c1_i32_40, %c0_i32_89, %c0_i32_90] : memref<2x256x128xf32, #tpu.memory_space<vmem>> -> memref<1x256x128xf32, #tpu.memory_space<vmem>>
      %157 = tpu.memref_squeeze %156 : memref<1x256x128xf32, #tpu.memory_space<vmem>> -> memref<256x128xf32, #tpu.memory_space<vmem>>
      %158 = arith.index_cast %155 : i32 to index
      %c0_91 = arith.constant 0 : index
      %159 = vector.load %157[%158, %c0_91] : memref<256x128xf32, #tpu.memory_space<vmem>>, vector<16x128xf32>
      %160 = vector.shape_cast %159 : vector<16x128xf32> to vector<1x16x128xf32>
      %161 = vector.extract_strided_slice %99 {offsets = [0, 4, 0], sizes = [2, 1, 128], strides = [1, 1, 1]} : vector<2x8x128xf32> to vector<2x1x128xf32>
      %162 = vector.broadcast %160 : vector<1x16x128xf32> to vector<2x16x128xf32>
      %163 = vector.broadcast %161 : vector<2x1x128xf32> to vector<2x16x128xf32>
      %164 = arith.mulf %162, %163 : vector<2x16x128xf32>
      %165 = arith.addf %152, %164 : vector<2x16x128xf32>
      %c96_i32 = arith.constant 96 : i32
      %166 = arith.addi %c96_i32, %101 : i32
      %c8_i32_92 = arith.constant 8 : i32
      %167 = arith.subi %166, %c8_i32_92 : i32
      %168 = tpu.assume_multiple %167, 8 : i32
      %c0_i32_93 = arith.constant 0 : i32
      %c0_i32_94 = arith.constant 0 : i32
      %169 = tpu.memref_slice %arg4[%c1_i32_40, %c0_i32_93, %c0_i32_94] : memref<2x256x128xf32, #tpu.memory_space<vmem>> -> memref<1x256x128xf32, #tpu.memory_space<vmem>>
      %170 = tpu.memref_squeeze %169 : memref<1x256x128xf32, #tpu.memory_space<vmem>> -> memref<256x128xf32, #tpu.memory_space<vmem>>
      %171 = arith.index_cast %168 : i32 to index
      %c0_95 = arith.constant 0 : index
      %172 = vector.load %170[%171, %c0_95] : memref<256x128xf32, #tpu.memory_space<vmem>>, vector<16x128xf32>
      %173 = vector.shape_cast %172 : vector<16x128xf32> to vector<1x16x128xf32>
      %174 = vector.extract_strided_slice %99 {offsets = [0, 5, 0], sizes = [2, 1, 128], strides = [1, 1, 1]} : vector<2x8x128xf32> to vector<2x1x128xf32>
      %175 = vector.broadcast %173 : vector<1x16x128xf32> to vector<2x16x128xf32>
      %176 = vector.broadcast %174 : vector<2x1x128xf32> to vector<2x16x128xf32>
      %177 = arith.mulf %175, %176 : vector<2x16x128xf32>
      %178 = arith.addf %165, %177 : vector<2x16x128xf32>
      %c64_i32 = arith.constant 64 : i32
      %179 = arith.addi %c64_i32, %101 : i32
      %c8_i32_96 = arith.constant 8 : i32
      %180 = arith.subi %179, %c8_i32_96 : i32
      %181 = tpu.assume_multiple %180, 8 : i32
      %c0_i32_97 = arith.constant 0 : i32
      %c0_i32_98 = arith.constant 0 : i32
      %182 = tpu.memref_slice %arg4[%c1_i32_40, %c0_i32_97, %c0_i32_98] : memref<2x256x128xf32, #tpu.memory_space<vmem>> -> memref<1x256x128xf32, #tpu.memory_space<vmem>>
      %183 = tpu.memref_squeeze %182 : memref<1x256x128xf32, #tpu.memory_space<vmem>> -> memref<256x128xf32, #tpu.memory_space<vmem>>
      %184 = arith.index_cast %181 : i32 to index
      %c0_99 = arith.constant 0 : index
      %185 = vector.load %183[%184, %c0_99] : memref<256x128xf32, #tpu.memory_space<vmem>>, vector<16x128xf32>
      %186 = vector.shape_cast %185 : vector<16x128xf32> to vector<1x16x128xf32>
      %187 = vector.extract_strided_slice %99 {offsets = [0, 6, 0], sizes = [2, 1, 128], strides = [1, 1, 1]} : vector<2x8x128xf32> to vector<2x1x128xf32>
      %188 = vector.broadcast %186 : vector<1x16x128xf32> to vector<2x16x128xf32>
      %189 = vector.broadcast %187 : vector<2x1x128xf32> to vector<2x16x128xf32>
      %190 = arith.mulf %188, %189 : vector<2x16x128xf32>
      %191 = arith.addf %178, %190 : vector<2x16x128xf32>
      %c32_i32 = arith.constant 32 : i32
      %192 = arith.addi %c32_i32, %101 : i32
      %c8_i32_100 = arith.constant 8 : i32
      %193 = arith.subi %192, %c8_i32_100 : i32
      %194 = tpu.assume_multiple %193, 8 : i32
      %c0_i32_101 = arith.constant 0 : i32
      %c0_i32_102 = arith.constant 0 : i32
      %195 = tpu.memref_slice %arg4[%c1_i32_40, %c0_i32_101, %c0_i32_102] : memref<2x256x128xf32, #tpu.memory_space<vmem>> -> memref<1x256x128xf32, #tpu.memory_space<vmem>>
      %196 = tpu.memref_squeeze %195 : memref<1x256x128xf32, #tpu.memory_space<vmem>> -> memref<256x128xf32, #tpu.memory_space<vmem>>
      %197 = arith.index_cast %194 : i32 to index
      %c0_103 = arith.constant 0 : index
      %198 = vector.load %196[%197, %c0_103] : memref<256x128xf32, #tpu.memory_space<vmem>>, vector<16x128xf32>
      %199 = vector.shape_cast %198 : vector<16x128xf32> to vector<1x16x128xf32>
      %200 = vector.extract_strided_slice %99 {offsets = [0, 7, 0], sizes = [2, 1, 128], strides = [1, 1, 1]} : vector<2x8x128xf32> to vector<2x1x128xf32>
      %201 = vector.broadcast %199 : vector<1x16x128xf32> to vector<2x16x128xf32>
      %202 = vector.broadcast %200 : vector<2x1x128xf32> to vector<2x16x128xf32>
      %203 = arith.mulf %201, %202 : vector<2x16x128xf32>
      %204 = arith.addf %191, %203 : vector<2x16x128xf32>
      %c0_104 = arith.constant 0 : index
      %c0_105 = arith.constant 0 : index
      %c0_106 = arith.constant 0 : index
      %205 = vector.load %arg12[%c0_104, %c0_105, %c0_106] : memref<2x16x128xf32, #tpu.memory_space<vmem>>, vector<2x16x128xf32>
      %206 = arith.addf %205, %204 : vector<2x16x128xf32>
      %c0_107 = arith.constant 0 : index
      %c0_108 = arith.constant 0 : index
      %c0_109 = arith.constant 0 : index
      %207 = vector.load %arg12[%c0_107, %c0_108, %c0_109] : memref<2x16x128xf32, #tpu.memory_space<vmem>>, vector<2x16x128xf32>
      tpu.vector_store %arg12[%c0_107, %c0_108, %c0_109], %206 {strides = array<i32>} : memref<2x16x128xf32, #tpu.memory_space<vmem>>, vector<2x16x128xf32>,
    }
    %c2_i32_44 = arith.constant 2 : i32
    %c0_45 = arith.constant 0 : index
    %c0_46 = arith.constant 0 : index
    %c0_47 = arith.constant 0 : index
    %56 = vector.load %arg12[%c0_45, %c0_46, %c0_47] : memref<2x16x128xf32, #tpu.memory_space<vmem>>, vector<2x16x128xf32>
    %57 = vector.shape_cast %56 : vector<2x16x128xf32> to vector<32x128xf32>
    %58 = arith.mulf %57, %57 : vector<32x128xf32>
    %59 = arith.mulf %57, %58 : vector<32x128xf32>
    %cst_48 = arith.constant 4.471500e-02 : f32
    %60 = vector.broadcast %cst_48 : f32 to vector<32x128xf32>
    %61 = arith.mulf %60, %59 : vector<32x128xf32>
    %62 = arith.addf %57, %61 : vector<32x128xf32>
    %cst_49 = arith.constant 0.797884583 : f32
    %63 = vector.broadcast %cst_49 : f32 to vector<32x128xf32>
    %64 = arith.mulf %63, %62 : vector<32x128xf32>
    %65 = math.tanh %64 : vector<32x128xf32>
    %cst_50 = arith.constant 1.000000e+00 : f32
    %66 = vector.broadcast %cst_50 : f32 to vector<32x128xf32>
    %67 = arith.addf %66, %65 : vector<32x128xf32>
    %cst_51 = arith.constant 5.000000e-01 : f32
    %68 = vector.broadcast %cst_51 : f32 to vector<32x128xf32>
    %69 = arith.mulf %68, %67 : vector<32x128xf32>
    %70 = arith.mulf %57, %69 : vector<32x128xf32>
    %71 = arith.truncf %70 : vector<32x128xf32> to vector<32x128xbf16>
    %c1_52 = arith.constant 1 : index
    %c0_53 = arith.constant 0 : index
    %c0_54 = arith.constant 0 : index
    %72 = vector.load %arg6[%c1_52, %c0_53, %c0_54] : memref<2x128x256xbf16, #tpu.memory_space<vmem>>, vector<1x128x256xbf16>
    %73 = vector.shape_cast %72 : vector<1x128x256xbf16> to vector<128x256xbf16>
    %cst_55 = arith.constant dense<0.000000e+00> : vector<32x256xf32>
    %74 = tpu.matmul %71, %73, %cst_55 {dimension_numbers = #tpu.dot_dimension_numbers<[1], [0], [0], [1], [0, 0, 1, 1], [], []>} : vector<32x128xbf16>, vector<128x256xbf16>, vector<32x256xf32> -> vector<32x256xf32>
    %c1_56 = arith.constant 1 : index
    %c0_57 = arith.constant 0 : index
    %c0_58 = arith.constant 0 : index
    %75 = vector.load %arg7[%c1_56, %c0_57, %c0_58] : memref<2x1x256xf32, #tpu.memory_space<vmem>>, vector<1x1x256xf32>
    %76 = vector.shape_cast %75 : vector<1x1x256xf32> to vector<1x256xf32>
    %77 = vector.broadcast %76 : vector<1x256xf32> to vector<32x256xf32>
    %78 = arith.addf %74, %77 : vector<32x256xf32>
    %79 = vector.extract_strided_slice %78 {offsets = [0, 0], sizes = [32, 128], strides = [1, 1]} : vector<32x256xf32> to vector<32x128xf32>
    %80 = vector.extract_strided_slice %78 {offsets = [0, 128], sizes = [32, 128], strides = [1, 1]} : vector<32x256xf32> to vector<32x128xf32>
    %81 = arith.negf %80 : vector<32x128xf32>
    %82 = math.exp %81 : vector<32x128xf32>
    %cst_59 = arith.constant 1.000000e+00 : f32
    %83 = vector.broadcast %cst_59 : f32 to vector<32x128xf32>
    %84 = arith.addf %83, %82 : vector<32x128xf32>
    %85 = arith.divf %83, %84 : vector<32x128xf32>
    %86 = arith.mulf %79, %85 : vector<32x128xf32>
    %87 = arith.truncf %86 : vector<32x128xf32> to vector<32x128xbf16>
    %c0_60 = arith.constant 0 : index
    %c0_61 = arith.constant 0 : index
    %88 = vector.load %arg8[%c0_60, %c0_61] : memref<128x128xbf16, #tpu.memory_space<vmem>>, vector<128x128xbf16>
    %cst_62 = arith.constant dense<0.000000e+00> : vector<32x128xf32>
    %89 = tpu.matmul %87, %88, %cst_62 {dimension_numbers = #tpu.dot_dimension_numbers<[1], [0], [0], [1], [0, 0, 1, 1], [], []>} : vector<32x128xbf16>, vector<128x128xbf16>, vector<32x128xf32> -> vector<32x128xf32>
    %c0_63 = arith.constant 0 : index
    %c0_64 = arith.constant 0 : index
    %90 = vector.load %arg9[%c0_63, %c0_64] : memref<1x128xf32, #tpu.memory_space<vmem>>, vector<1x128xf32>
    %91 = vector.broadcast %90 : vector<1x128xf32> to vector<32x128xf32>
    %92 = arith.addf %89, %91 : vector<32x128xf32>
    %93 = vector.shape_cast %92 : vector<32x128xf32> to vector<2x16x128xf32>
    %94 = arith.truncf %93 : vector<2x16x128xf32> to vector<2x16x128xbf16>
    %c0_65 = arith.constant 0 : index
    %c0_66 = arith.constant 0 : index
    %c0_67 = arith.constant 0 : index
    %95 = vector.load %arg10[%c0_65, %c0_66, %c0_67] : memref<2x16x128xbf16, #tpu.memory_space<vmem>>, vector<2x16x128xbf16>
    tpu.vector_store %arg10[%c0_65, %c0_66, %c0_67], %94 {strides = array<i32>} : memref<2x16x128xbf16, #tpu.memory_space<vmem>>, vector<2x16x128xbf16>,
    return
  }
  func.func @transform_0(%arg0: i32) -> (i32, i32, i32) {
    %c0_i32 = arith.constant 0 : i32
    %c0_i32_0 = arith.constant 0 : i32
    %c0_i32_1 = arith.constant 0 : i32
    return %arg0, %c0_i32, %c0_i32_0 : i32, i32, i32
  }
  func.func @transform_1(%arg0: i32) -> (i32, i32) {
    %c0_i32 = arith.constant 0 : i32
    %c0_i32_0 = arith.constant 0 : i32
    %c0_i32_1 = arith.constant 0 : i32
    return %c0_i32, %c0_i32_0 : i32, i32
  }
  func.func @transform_2(%arg0: i32) -> (i32, i32) {
    %c0_i32 = arith.constant 0 : i32
    %c0_i32_0 = arith.constant 0 : i32
    %c0_i32_1 = arith.constant 0 : i32
    return %c0_i32, %c0_i32_0 : i32, i32
  }
  func.func @transform_3(%arg0: i32) -> (i32, i32, i32) {
    %c0_i32 = arith.constant 0 : i32
    %c0_i32_0 = arith.constant 0 : i32
    %c0_i32_1 = arith.constant 0 : i32
    %c0_i32_2 = arith.constant 0 : i32
    return %c0_i32, %c0_i32_0, %c0_i32_1 : i32, i32, i32
  }
  func.func @transform_4(%arg0: i32) -> (i32, i32, i32) {
    %c0_i32 = arith.constant 0 : i32
    %c0_i32_0 = arith.constant 0 : i32
    %c0_i32_1 = arith.constant 0 : i32
    %c0_i32_2 = arith.constant 0 : i32
    return %c0_i32, %c0_i32_0, %c0_i32_1 : i32, i32, i32
  }
  func.func @transform_5(%arg0: i32) -> (i32, i32, i32) {
    %c0_i32 = arith.constant 0 : i32
    %c0_i32_0 = arith.constant 0 : i32
    %c0_i32_1 = arith.constant 0 : i32
    %c0_i32_2 = arith.constant 0 : i32
    return %c0_i32, %c0_i32_0, %c0_i32_1 : i32, i32, i32
  }
  func.func @transform_6(%arg0: i32) -> (i32, i32, i32) {
    %c0_i32 = arith.constant 0 : i32
    %c0_i32_0 = arith.constant 0 : i32
    %c0_i32_1 = arith.constant 0 : i32
    %c0_i32_2 = arith.constant 0 : i32
    return %c0_i32, %c0_i32_0, %c0_i32_1 : i32, i32, i32
  }
  func.func @transform_7(%arg0: i32) -> (i32, i32) {
    %c0_i32 = arith.constant 0 : i32
    %c0_i32_0 = arith.constant 0 : i32
    %c0_i32_1 = arith.constant 0 : i32
    return %c0_i32, %c0_i32_0 : i32, i32
  }
  func.func @transform_8(%arg0: i32) -> (i32, i32) {
    %c0_i32 = arith.constant 0 : i32
    %c0_i32_0 = arith.constant 0 : i32
    %c0_i32_1 = arith.constant 0 : i32
    return %c0_i32, %c0_i32_0 : i32, i32
  }
  func.func @transform_9(%arg0: i32) -> (i32, i32, i32) {
    %c0_i32 = arith.constant 0 : i32
    %c0_i32_0 = arith.constant 0 : i32
    %c0_i32_1 = arith.constant 0 : i32
    return %arg0, %c0_i32, %c0_i32_0 : i32, i32, i32
  }
}

</mosaic_0001>

<bundles_post_ra>
// kernel: tpu_custom_call.1
= control target key start
LH: loop header
LB: loop body
LE: loop exit
PB: predicated region body
PF: predicated region fallthrough
CT: control target
= control target key end

     0   :  { %14 = vsyncpa [#allocation5], 0  ;;  %s2609_s0 = inlined_call_operand.vmem [shape: bf16[4,16,8], index: 0, kind: input, shape index: {}]   ;;  %s2610_s1 = inlined_call_operand.vmem [shape: bf16[8,128], index: 1, kind: input, shape index: {}]   ;;  %s2611_s2 = inlined_call_operand.hbm [shape: f32[1,128], index: 2, kind: input, shape index: {}]   ;;  %s2612_s3 = inlined_call_operand.hbm [shape: f32[2,256,128], index: 3, kind: input, shape index: {}]   ;;  %s2613_s4 = inlined_call_operand.vmem [shape: f32[2,1,128], index: 4, kind: input, shape index: {}]   ;;  %s2614_s5 = inlined_call_operand.hbm [shape: bf16[2,128,256], index: 5, kind: input, shape index: {}]   ;;  %s2615_s6 = inlined_call_operand.vmem [shape: f32[2,1,256], index: 6, kind: input, shape index: {}]   ;;  %s2616_s7 = inlined_call_operand.vmem [shape: bf16[128,128], index: 7, kind: input, shape index: {}]   ;;  %s2617_s8 = inlined_call_operand.vmem [shape: f32[1,128], index: 8, kind: input, shape index: {}]   ;;  %s2618_s9 = inlined_call_operand.hbm [shape: bf16[4,16,128], index: 9, kind: output, shape index: {}]  }
   0x1   :  { %15 = vsyncpa [#allocation8], 0 }
   0x2   :  { %16 = vsyncpa [#allocation6], 0 }
   0x3   :  { %18 = vsyncpa [#allocation6 + $0x1], 0  ;;  %s2196_s30 = smov 0   ;;  %s2198_s10 = smov 0  }
   0x4   :  { %s2200_s11 = smov 0   ;;  %s2202_s12 = smov 0  }
   0x5 LB: > { %2627 = sst [smem:[#allocation14_spill]] %s2115_s30  ;;  %s2217_s13 = sadd.s32 4294967295, %s2127_s12   ;;  %s2127_s12 = sphi %s2202_s12, %s2646_s12   ;;  %s2123_s11 = sphi %s2200_s11, %s2648_s11   ;;  %s2119_s10 = sphi %s2198_s10, %s2650_s10   ;;  %s2115_s30 = sphi %s2196_s30, %s2649_s30  }
   0x6   : > { %2628 = sst [smem:[#allocation15_spill]] %s2123_s11  ;;  %s1610_s14 = sadd.s32 4294967294, %s2127_s12  }
   0x7   : > { %s2221_s15 = sadd.s32 1, %s2127_s12   ;;  %s225_s16 = sadd.s32 1, %s2123_s11 }
   0x8   : > { %2629 = sst [smem:[#allocation16_spill]] %s2221_s15  ;;  %s222_s17 = ssub.s32 %s2127_s12, %s2221_s15 }
   0x9   : > { %p235_p0 = scmp.ne.s32.totalorder %s2123_s11, %s2119_s10  ;;  %p223_p1 = scmp.eq.s32.totalorder %s222_s17, 0 }
   0xa   : > { %p236_p2 = scmp.eq.s32.totalorder %s2217_s13, 1  ;;  %p241_p3 = scmp.ne.s32.totalorder %s2119_s10, %s2115_s30 }
   0xb   : > { %p242_p4 = scmp.eq.s32.totalorder %s1610_s14, 1  ;;  %p1611_p7 = scmp.ge.s32.totalorder %s2127_s12, 1 }
   0xc   : > { %s2232_s18 = scalar_select %p223_p1, %s2123_s11, %s225_s16  }
   0xd   : > { %p2234_p5 = por %p236_p2, %p235_p0  ;;  %p2238_p6 = por %p242_p4, %p241_p3 }
   0xe   : > { %2630 = sst [smem:[#allocation17_spill]] %s2232_s18  ;;  %p249_p8 = scmp.lt.s32.totalorder %s2127_s12, 3 }
   0xf   : > { %s2631_s19 = scalar_select %p2234_p5, 1, 0 }
  0x10   : > { %s2632_s20 = scalar_select %p2238_p6, 1, 0 }
  0x11   : > { %p2619_p9 = scmp.eq.s32.totalorder %s2217_s13, 0  ;;  %p2245_p10 = pnand %p1611_p7, %p249_p8 }
  0x12   : > { %2633 = sst [smem:[#allocation18_spill]] %s2632_s20  ;;  %s2137_s22 = smov [#allocation7]  }
  0x13   : > { %s2634_s21 = scalar_select %p2245_p10, 1, 0 }
  0x14   : > { %s275_s23 = sshll.u32 %s2137_s22, 4  ;;  %p1782_p11 = pneg %p2245_p10  ;;  %s2251_s23 = int_to_ptr.vmem [resolvable:$true] %s275_s23 }
  0x15   : > { %s2138_s25 = smov [#allocation4]   ;;  %s2139_s27 = smov [#allocation9]  }
  0x16   : > { %p2255_p12 = pnand %p2619_p9, %p1782_p11  ;;  %s265_s26 = sshll.u32 %s2138_s25, 4  ;;  %s2259_s26 = int_to_ptr.vmem [resolvable:$true] %s265_s26 }
  0x17   : > { %s2261_s28 = sshll.u32 %s2139_s27, 4  ;;  %s1965_s16 = scalar_lea.hbm %s2612_s3, 8192  ;;  %s292_s28 = int_to_ptr.vmem [resolvable:$true] %s2261_s28 }
  0x18   : > { %p1966_p13 = scmp.ne.s32.totalorder %s2612_s3, %s1965_s16  ;;  %p2271_p0 = pneg %p2255_p12 }
  0x19   : > { %p1972_p3 = scmp.lt.u32.totalorder %s1965_s16, %s2612_s3 }
  0x1a   : > { %p1968_p1 = pnand %p2271_p0, %p1966_p13 }
  0x1c   : > { %p1969_p2 = pneg %p1968_p1 }
  0x1e   : > { %p1974_p4 = pnand %p1972_p3, %p1969_p2 }
  0x20   : > { %1977 = shalt.err (!%p1974_p4)
}
  0x21   : > { %s1978_s29 = scalar_lea.vmem %s2251_s23, 8192  ;;  %p1986_p9 = scmp.lt.s32.totalorder %s2251_s23, %s2251_s23 }
  0x22   : > { %p1979_p7 = scmp.ne.s32.totalorder %s2251_s23, %s1978_s29  ;;  %p1987_p6 = scmp.lt.s32.totalorder %s1978_s29, %s1978_s29 }
  0x24   : > { %p1981_p8 = pnand %p1979_p7, %p2271_p0  ;;  %p1988_p13 = por %p1987_p6, %p1986_p9 }
  0x26   : > { %p1982_p11 = pneg %p1981_p8 }
  0x28   : > { %p1989_p1 = pnand %p1988_p13, %p1982_p11 }
  0x2a   : > { %1992 = shalt.err (!%p1989_p1)
}
  0x2b   : > { %s2140_s14 = smov 128   ;;  %s2141_s16 = smov 8  }
  0x2c   : > { %1788 = dma.hbm_to_vmem [thread:$0]  (!%p2255_p12), %s2612_s3, 8192, %s2251_s23, [#allocation8], %s2140_s14, %s2140_s14, %s2141_s16  }
  0x2d   : > { %s1993_s29 = scalar_lea.hbm %s2611_s2, 16 }
  0x2e   : > { %p1994_p6 = scmp.ne.s32.totalorder %s2611_s2, %s1993_s29  ;;  %p2000_p3 = scmp.lt.u32.totalorder %s1993_s29, %s2611_s2 }
  0x30   : > { %p1996_p9 = pnand %p1994_p6, %p2271_p0 }
  0x32   : > { %p1997_p2 = pneg %p1996_p9 }
  0x34   : > { %p2002_p4 = pnand %p2000_p3, %p1997_p2 }
  0x36   : > { %2005 = shalt.err (!%p2002_p4)
}
  0x37   : > { %s2006_s23 = scalar_lea.vmem %s2259_s26, 16  ;;  %s2013_s11 = scalar_lea.vmem %s2259_s26, 32 }
  0x38   : > { %p2007_p7 = scmp.ne.s32.totalorder %s2259_s26, %s2006_s23  ;;  %p2014_p13 = scmp.lt.s32.totalorder %s2259_s26, %s2259_s26 }
  0x39   : > { %p2015_p1 = scmp.lt.s32.totalorder %s2013_s11, %s2006_s23 }
  0x3a   : > { %p2009_p8 = pnand %p2007_p7, %p2271_p0 }
  0x3b   : > { %p2016_p6 = por %p2015_p1, %p2014_p13 }
  0x3c   : > { %p2010_p11 = pneg %p2009_p8 }
  0x3e   : > { %p2017_p9 = pnand %p2016_p6, %p2010_p11 }
  0x40   : > { %2020 = shalt.err (!%p2017_p9)
}
  0x41   : > { %1785 = dma.hbm_to_vmem [thread:$0]  (!%p2255_p12), %s2611_s2, 16, %s2259_s26, [#allocation5]  }
  0x42   : > { %s2021_s22 = scalar_lea.hbm %s2614_s5, 4096 }
  0x43   : > { %p2022_p2 = scmp.ne.s32.totalorder %s2614_s5, %s2021_s22  ;;  %p2028_p7 = scmp.lt.u32.totalorder %s2021_s22, %s2614_s5 }
  0x45   : > { %p2024_p3 = pnand %p2022_p2, %p2271_p0 }
  0x47   : > { %p2025_p4 = pneg %p2024_p3 }
  0x49   : > { %p2030_p8 = pnand %p2028_p7, %p2025_p4 }
  0x4b   : > { %2033 = shalt.err (!%p2030_p8)
}
  0x4c   : > { %s2034_s11 = scalar_lea.vmem %s292_s28, 4096  ;;  %p2042_p6 = scmp.lt.s32.totalorder %s292_s28, %s292_s28 }
  0x4d   : > { %p2035_p11 = scmp.ne.s32.totalorder %s292_s28, %s2034_s11  ;;  %p2043_p9 = scmp.lt.s32.totalorder %s2034_s11, %s2034_s11 }
  0x4f   : > { %p2037_p13 = pnand %p2035_p11, %p2271_p0  ;;  %p2044_p5 = por %p2043_p9, %p2042_p6 }
  0x51   : > { %p2038_p1 = pneg %p2037_p13 }
  0x53   : > { %p2045_p10 = pnand %p2044_p5, %p2038_p1 }
  0x55   : > { %2048 = shalt.err (!%p2045_p10)
}
  0x56   : > { %1791 = dma.hbm_to_vmem [thread:$0]  (!%p2255_p12), %s2614_s5, 4096, %s292_s28, [#allocation8], %s2140_s14, %s2140_s14, %s2141_s16  }
  0x57   : > { %p2637_p2 = scmp.ne.s32.totalorder %s2634_s21, 0 }
  0x58   : > { %p2638_p0 = scmp.eq.s32.totalorder (!%p2637_p2), %s2217_s13, 0 }
  0x59   : > { %326 = sbr.rel (%p2637_p2) target bundleno = 1201 (0x4b1), region = 56 }
  0x60   : > { %2102 = dma.done.wait (%p2638_p0), [#allocation5], 16   ;;  %p2639_p3 = pmov %p2638_p0 }
  0x61   : > { %p2640_p5 = pmov %p2638_p0 }
  0x62   : > { %2104 = vsyncadd (%p2639_p3), [#allocation5], 4294967280 }
  0x63   : > { %2106 = dma.done.wait (%p2640_p5), [#allocation8], 12288   ;;  %p2641_p10 = pmov %p2638_p0 }
  0x64   : > { %s368_s18 = sand.u32 1, %s2119_s10   ;;  %s1621_s24 = sshll.u32 %s2217_s13, 1  ;;  %vm409_vm0 = vcmask 1043456   ;;  %vm402_vm1 = vcmask 64512   ;;  %v384_v0 = vld [vmem:[%s2610_s1] sm:$0xf] }
  0x65   : > { %2108 = vsyncadd (%p2641_p10), [#allocation8], 4294955008  ;;  %s2355_s21 = sshll.u32 %s368_s18, 4  ;;  %p372_p12 = scmp.lt.s32.totalorder %s1621_s24, 3  ;;  %1767 = vmatprep.subr.msk.bf16.mxu0 %vm409_vm0, %v384_v0  ;;  %v411_v1 = vsel %vm409_vm0, %v384_v0, 0 }
  0x66   : > { %1742 = vmatpush3.bf16.msra.mxu0 %v411_v1  ;;  %v1624_v4 = vld [vmem:[#allocation4] ss:$0 sm:$0xff]  ;;  %s2367_s27 = scalar_lea.vmem [#allocation10], %s2355_s21  ;;  %s2369_s29 = smov 0  }
  0x67   : > { %s2652_s24 = smov (!%p372_p12, %s1621_s24), 3  ;;  %v1629_v6 = vld [vmem:[%s2613_s4] ss:$0 sm:$0xff] }
  0x68   : > { %s1710_s28 = sshll.u32 %s2652_s24, 3 }
  0x69   : > { %s376_s15 = scalar_lea.vmem %s2609_s0, %s1710_s28 }
  0x6a   : > { %v1859_v2 = vld [vmem:[%s376_s15] sm:$0xff]   ;;  %v1860_v3 = vld [vmem:[%s376_s15 + $0x8] sm:$0xff]  }
  0x6b   : > { %1743 = vmatprep.mubr.msk.bf16.mxu0 %vm402_vm1, %v1859_v2 }
  0x6c   : > { %1744 = vmatmul.mubr.msk.bf16.vlgmr.msra.gmra.mrb[0].mxu0 %vm402_vm1, %v1860_v3 }
 0x13f   : > { %v1745_v5 = vpop.f32.mrb[0].mxu0 }
 0x140   : > { %v456_v7 = vadd.f32 %v1745_v5, %v1624_v4  ;;  %v447_v8 = vpop.f32.mrb[1].mxu0 }
 0x141   : > { %v448_v9 = vadd.f32 %v1624_v4, %v447_v8  ;;  %v1746_v10 = vpop.f32.mrb[2].mxu0 }
 0x142   : > { %464 = vst [vmem:[#allocation2 + $0x10] sm:$0xff] %v456_v7  ;;  %v475_v11 = vmul.f32 %v1629_v6, %v456_v7  ;;  %v459_v12 = vadd.f32 %v1746_v10, %v1624_v4  ;;  %v450_v13 = vpop.f32.mrb[3].mxu0 }
 0x143   : > { %462 = vst [vmem:[#allocation2] sm:$0xff] %v448_v9  ;;  %v473_v14 = vmul.f32 %v1629_v6, %v448_v9  ;;  %v451_v15 = vadd.f32 %v1624_v4, %v450_v13 }
 0x144   : > { %479 = vst [vmem:[#allocation3 + $0x10] sm:$0xff] %v475_v11  ;;  %465 = vst [vmem:[#allocation2 + $0x18] sm:$0xff] %v459_v12  ;;  %v476_v16 = vmul.f32 %v1629_v6, %v459_v12 }
 0x145   : > { %477 = vst [vmem:[#allocation3] sm:$0xff] %v473_v14  ;;  %463 = vst [vmem:[#allocation2 + $0x8] sm:$0xff] %v451_v15  ;;  %v474_v17 = vmul.f32 %v1629_v6, %v451_v15 }
 0x146   : > { %480 = vst [vmem:[#allocation3 + $0x18] sm:$0xff] %v476_v16 }
 0x147   : > { %478 = vst [vmem:[#allocation3 + $0x8] sm:$0xff] %v474_v17 }
 0x148 LB: >> { %v495_v18 = vlaneseq  ;;  %s2375_s23 = sshll.u32 %s2131_s29, 3  ;;  %s486_s29 = sadd.s32 1, %s2131_s29   ;;  %s2131_s29 = sphi %s2369_s29, %s486_s29  }
 0x149   : >> { %s491_s11 = ssub.s32 16, %s2375_s23  ;;  %s488_s26 = scalar_lea.vmem [#allocation2], %s2375_s23 }
 0x14a   : >> { %v496_v19 = vshrl.u32 %v495_v18, 7  ;;  %s507_s30 = ssub.s32 232, %s2375_s23  ;;  %s492_s24 = scalar_lea.vmem [#allocation7], %s491_s11 }
 0x14b   : >> { %v2388_v24 = vld [vmem:[%s492_s24] sm:$0xff]  ;;  %s527_s21 = ssub.s32 200, %s2375_s23  ;;  %s508_s28 = scalar_lea.vmem [#allocation7], %s507_s30  ;;  %v2403_v33 = vld [vmem:[%s492_s24 + $0x8] sm:$0xff] }
 0x14c   : >> { %v489_v20 = vld [vmem:[%s488_s26] sm:$0xff]  ;;  %v2381_v21 = vsub.s32 0, %v496_v19  ;;  %v2384_v22 = vsub.s32 1, %v496_v19  ;;  %v2386_v23 = vsub.s32 2, %v496_v19  ;;  %v2391_v25 = vsub.s32 3, %v496_v19  ;;  %s547_s14 = ssub.s32 168, %s2375_s23 }
 0x14d   : >> { %v2393_v26 = vsub.s32 4, %v496_v19  ;;  %v2395_v27 = vsub.s32 5, %v496_v19  ;;  %v509_v29 = vld [vmem:[%s508_s28] sm:$0xff]  ;;  %v2401_v32 = vsub.s32 6, %v496_v19  ;;  %v2405_v34 = vld [vmem:[%s508_s28 + $0x8] sm:$0xff]  ;;  %s528_s16 = scalar_lea.vmem [#allocation7], %s527_s21 }
 0x14e   : >> { %v498_v28 = vrot.slane %v489_v20, %v2381_v21  ;;  %v514_v30 = vrot.slane %v489_v20, %v2384_v22  ;;  %v534_v31 = vrot.slane %v489_v20, %v2386_v23  ;;  %v529_v35 = vld [vmem:[%s528_s16] sm:$0xff]  ;;  %v554_v36 = vrot.slane %v489_v20, %v2391_v25  ;;  %s567_s15 = ssub.s32 136, %s2375_s23  ;;  %v2412_v39 = vld [vmem:[%s528_s16 + $0x8] sm:$0xff]  ;;  %s548_s20 = scalar_lea.vmem [#allocation7], %s547_s14  ;;  %v490_v51 = vld [vmem:[%s488_s26 + $0x10] sm:$0xff] }
 0x14f   : >> { %v574_v37 = vrot.slane %v489_v20, %v2393_v26  ;;  %v2410_v38 = vsub.s32 7, %v496_v19  ;;  %v549_v43 = vld [vmem:[%s548_s20] sm:$0xff]  ;;  %s587_s17 = ssub.s32 104, %s2375_s23  ;;  %v594_v44 = vrot.slane %v489_v20, %v2395_v27  ;;  %v2417_v45 = vld [vmem:[%s548_s20 + $0x8] sm:$0xff]  ;;  %s568_s22 = scalar_lea.vmem [#allocation7], %s567_s15  ;;  %v614_v47 = vrot.slane %v489_v20, %v2401_v32 }
 0x150   : >> { %v503_v40 = vmul.f32 %v498_v28, %v2388_v24  ;;  %v519_v41 = vmul.f32 %v514_v30, %v509_v29  ;;  %v539_v42 = vmul.f32 %v534_v31, %v529_v35  ;;  %v569_v46 = vld [vmem:[%s568_s22] sm:$0xff]  ;;  %s607_s25 = ssub.s32 72, %s2375_s23  ;;  %v504_v48 = vmul.f32 %v498_v28, %v2403_v33  ;;  %v2423_v50 = vld [vmem:[%s568_s22 + $0x8] sm:$0xff]  ;;  %s588_s11 = scalar_lea.vmem [#allocation7], %s587_s17 }
 0x151   : >> { %v520_v49 = vmul.f32 %v514_v30, %v2405_v34  ;;  %v559_v53 = vmul.f32 %v554_v36, %v549_v43  ;;  %v589_v54 = vld [vmem:[%s588_s11] sm:$0xff]  ;;  %s627_s30 = ssub.s32 40, %s2375_s23  ;;  %v540_v55 = vmul.f32 %v534_v31, %v2412_v39  ;;  %v2429_v56 = vld [vmem:[%s588_s11 + $0x8] sm:$0xff]  ;;  %v579_v57 = vmul.f32 %v574_v37, %v569_v46  ;;  %s608_s24 = scalar_lea.vmem [#allocation7], %s607_s25 }
 0x152   : >> { %v523_v52 = vadd.f32 %v519_v41, %v503_v40  ;;  %v609_v58 = vld [vmem:[%s608_s24] sm:$0xff]  ;;  %v634_v59 = vrot.slane %v489_v20, %v2410_v38  ;;  %v560_v61 = vmul.f32 %v554_v36, %v2417_v45  ;;  %v599_v63 = vmul.f32 %v594_v44, %v589_v54  ;;  %v610_v1 = vld [vmem:[%s608_s24 + $0x8] sm:$0xff]  ;;  %s628_s23 = scalar_lea.vmem [#allocation7], %s627_s30  ;;  %p483_p4 = scmp.ge.s32.totalorder %s486_s29, 2  }
 0x153   : >> { %v524_v60 = vadd.f32 %v520_v49, %v504_v48  ;;  %v580_v0 = vmul.f32 %v574_v37, %v2423_v50  ;;  %v502_v2 = vrot.slane %v490_v51, %v2381_v21  ;;  %v619_v3 = vmul.f32 %v614_v47, %v609_v58  ;;  %v629_v4 = vld [vmem:[%s628_s23] sm:$0xff]  ;;  %v630_v9 = vld [vmem:[%s628_s23 + $0x8] sm:$0xff]  ;;  %s2463_s14 = smov (%p483_p4), 0  }
 0x154   : >> { %v543_v62 = vadd.f32 %v539_v42, %v523_v52  ;;  %v600_v6 = vmul.f32 %v594_v44, %v2429_v56  ;;  %v518_v7 = vrot.slane %v490_v51, %v2384_v22  ;;  %v538_v11 = vrot.slane %v490_v51, %v2386_v23  ;;  %v647_v52 = vld [vmem:[#allocation3] sm:$0xff] }
 0x155   : >> { %v544_v5 = vadd.f32 %v540_v55, %v524_v60  ;;  %v505_v10 = vmul.f32 %v502_v2, %v2388_v24  ;;  %v558_v12 = vrot.slane %v490_v51, %v2391_v25  ;;  %v620_v14 = vmul.f32 %v614_v47, %v610_v1 }
 0x156   : >> { %v563_v8 = vadd.f32 %v559_v53, %v543_v62  ;;  %v521_v15 = vmul.f32 %v518_v7, %v509_v29  ;;  %v578_v16 = vrot.slane %v490_v51, %v2393_v26  ;;  %v639_v18 = vmul.f32 %v634_v59, %v629_v4 }
 0x157   : >> { %v564_v13 = vadd.f32 %v560_v61, %v544_v5  ;;  %v541_v19 = vmul.f32 %v538_v11, %v529_v35  ;;  %v598_v20 = vrot.slane %v490_v51, %v2395_v27  ;;  %v640_v30 = vmul.f32 %v634_v59, %v630_v9  ;;  %v648_v59 = vld [vmem:[#allocation3 + $0x8] sm:$0xff] }
 0x158   : >> { %v583_v17 = vadd.f32 %v579_v57, %v563_v8  ;;  %v525_v31 = vadd.f32 %v521_v15, %v505_v10  ;;  %v561_v36 = vmul.f32 %v558_v12, %v549_v43  ;;  %v581_v24 = vmul.f32 %v578_v16, %v569_v46  ;;  %v1867_v15 = vld [vmem:[#allocation9 + $0x24] ss:$8 sps:$4 sm:$0xff] (%p483_p4)  }
 0x159   : >> { %v584_v28 = vadd.f32 %v580_v0, %v564_v13  ;;  %v618_v40 = vrot.slane %v490_v51, %v2401_v32  ;;  %v506_v41 = vmul.f32 %v502_v2, %v2403_v33  ;;  %v522_v29 = vmul.f32 %v518_v7, %v2405_v34  ;;  %v1863_v13 = vld [vmem:[#allocation9] ss:$8 sps:$4 sm:$0xff] (%p483_p4)  }
 0x15a   : >> { %v603_v37 = vadd.f32 %v599_v63, %v583_v17  ;;  %v545_v44 = vadd.f32 %v541_v19, %v525_v31  ;;  %v542_v47 = vmul.f32 %v538_v11, %v2412_v39  ;;  %v601_v35 = vmul.f32 %v598_v20, %v589_v54  ;;  %v1870_v17 = vld [vmem:[#allocation9 + $0x34] ss:$8 sps:$4 sm:$0xff] (%p483_p4)  }
 0x15b   : >> { %v604_v42 = vadd.f32 %v600_v6, %v584_v28  ;;  %v638_v49 = vrot.slane %v490_v51, %v2410_v38  ;;  %v526_v43 = vadd.f32 %v522_v29, %v506_v41  ;;  %v562_v46 = vmul.f32 %v558_v12, %v2417_v45  ;;  %v649_v6 = vld [vmem:[#allocation3 + $0x10] sm:$0xff]  ;;  %v650_v12 = vld [vmem:[#allocation3 + $0x18] sm:$0xff] }
 0x15c   : >> { %v623_v48 = vadd.f32 %v619_v3, %v603_v37  ;;  %v565_v55 = vadd.f32 %v561_v36, %v545_v44  ;;  %v621_v60 = vmul.f32 %v618_v40, %v609_v58  ;;  %v582_v34 = vmul.f32 %v578_v16, %v2423_v50  ;;  %v1869_v16 = vld [vmem:[#allocation9 + $0x20] ss:$8 sps:$4 sm:$0xff] (%p483_p4)   ;;  %v1873_v36 = vld [vmem:[#allocation9 + $0x44] ss:$8 sps:$4 sm:$0xff] (%p483_p4)  }
 0x15d   : >> { %v624_v53 = vadd.f32 %v620_v14, %v604_v42  ;;  %v546_v62 = vadd.f32 %v542_v47, %v526_v43  ;;  %v641_v39 = vmul.f32 %v638_v49, %v629_v4  ;;  %v602_v51 = vmul.f32 %v598_v20, %v2429_v56  ;;  %v1861_v56 = vld [vmem:[#allocation9 + $0x4] ss:$8 sps:$4 sm:$0xff] (%p483_p4)   ;;  %v1866_v14 = vld [vmem:[#allocation9 + $0x10] ss:$8 sps:$4 sm:$0xff] (%p483_p4)   ;;  %v1875_v47 = vld [vmem:[#allocation9 + $0x40] ss:$8 sps:$4 sm:$0xff] (%p483_p4)  }
 0x15e   : >> { %v643_v57 = vadd.f32 %v639_v18, %v623_v48  ;;  %v585_v61 = vadd.f32 %v581_v24, %v565_v55  ;;  %v622_v45 = vmul.f32 %v618_v40, %v610_v1  ;;  %v642_v8 = vmul.f32 %v638_v49, %v630_v9  ;;  %809 = vmatprep.subr.bf16.mxu1 (%p483_p4), %v1861_v56  ;;  %v1864_v9 = vld [vmem:[#allocation9 + $0x14] ss:$8 sps:$4 sm:$0xff] (%p483_p4)   ;;  %v1872_v18 = vld [vmem:[#allocation9 + $0x30] ss:$8 sps:$4 sm:$0xff] (%p483_p4)  }
 0x15f   : >> { %v644_v33 = vadd.f32 %v640_v30, %v624_v53  ;;  %v566_v2 = vadd.f32 %v562_v46, %v546_v62  ;;  %v2142_v1 = vmov (%p483_p4), 0   ;;  %810 = vmatpush1.bf16.msra.mxu1 (%p483_p4), %v1863_v13  ;;  %v1876_v48 = vld [vmem:[#allocation9 + $0x54] ss:$8 sps:$4 sm:$0xff] (%p483_p4)  }
 0x160   : >> { %v651_v63 = vadd.f32 %v647_v52, %v643_v57  ;;  %v605_v54 = vadd.f32 %v601_v35, %v585_v61  ;;  %841 = vmatprep.mubr.bf16.mxu1 (%p483_p4), %v2142_v1  ;;  %811 = vmatprep.subr.bf16.mxu1 (%p483_p4), %v1864_v9 }
 0x161   : >> { %v652_v0 = vadd.f32 %v648_v59, %v644_v33  ;;  %v586_v5 = vadd.f32 %v582_v34, %v566_v2  ;;  %v1878_v59 = vld [vmem:[#allocation9 + $0x50] ss:$8 sps:$4 sm:$0xff] (%p483_p4)  }
 0x162   : >> { %655 = vst [vmem:[#allocation3] sm:$0xff] %v651_v63  ;;  %v625_v3 = vadd.f32 %v621_v60, %v605_v54  ;;  %v1879_v60 = vld [vmem:[#allocation9 + $0x64] ss:$8 sps:$4 sm:$0xff] (%p483_p4)   ;;  %v1881_v63 = vld [vmem:[#allocation9 + $0x60] ss:$8 sps:$4 sm:$0xff] (%p483_p4)  }
 0x163   : >> { %656 = vst [vmem:[#allocation3 + $0x8] sm:$0xff] %v652_v0  ;;  %v606_v58 = vadd.f32 %v602_v51, %v586_v5  ;;  %812 = vmatpush1.bf16.msra.mxu1 (%p483_p4), %v1866_v14  ;;  %v1884_v0 = vld [vmem:[#allocation9 + $0x70] ss:$8 sps:$4 sm:$0xff] (%p483_p4)   ;;  %v717_v14 = vld [vmem:[%s2615_s6] sm:$0x3] (%p483_p4) }
 0x164   : >> { %v645_v7 = vadd.f32 %v641_v39, %v625_v3  ;;  %813 = vmatprep.subr.bf16.mxu1 (%p483_p4), %v1867_v15  ;;  %v1882_v39 = vld [vmem:[#allocation9 + $0x74] ss:$8 sps:$4 sm:$0xff] (%p483_p4)   ;;  %v726_v15 = vrot.slane (%p483_p4), %v717_v14, %v2384_v22 }
 0x165   : >> { %v626_v11 = vadd.f32 %v622_v45, %v606_v58  ;;  %485 = sbr.rel (!%p483_p4) target bundleno = 328 (0x148), region = 140 }
 0x166   : >> { %v653_v10 = vadd.f32 %v649_v6, %v645_v7 }
 0x167   : >> { %v646_v50 = vadd.f32 %v642_v8, %v626_v11  ;;  %814 = vmatpush1.bf16.msra.mxu1 (%p483_p4), %v1869_v16 }
 0x168   : >> { %657 = vst [vmem:[#allocation3 + $0x10] sm:$0xff] %v653_v10  ;;  %815 = vmatprep.subr.bf16.mxu1 (%p483_p4), %v1870_v17 }
 0x169   : >> { %v654_v4 = vadd.f32 %v650_v12, %v646_v50  ;;  %v659_v19 = vld [vmem:[#allocation3] sm:$0xff] (%p483_p4) }
 0x16a   : > { %v660_v20 = vld [vmem:[#allocation3 + $0x8] sm:$0xff] (%p483_p4)  ;;  %v663_v28 = vmul.f32 (%p483_p4), %v659_v19, %v659_v19 }
 0x16b   : >> { %658 = vst [vmem:[#allocation3 + $0x18] sm:$0xff] %v654_v4  ;;  %v664_v37 = vmul.f32 (%p483_p4), %v660_v20, %v660_v20  ;;  %816 = vmatpush1.bf16.msra.mxu1 (%p483_p4), %v1872_v18 }
 0x16c   : > { %v667_v41 = vmul.f32 %v663_v28, %v659_v19  ;;  %817 = vmatprep.subr.bf16.mxu1 %v1873_v36 }
 0x16d   : > { %v668_v42 = vmul.f32 %v664_v37, %v660_v20 }
 0x16e   : > { %v671_v35 = vmul.f32 0.044715, %v667_v41 }
 0x16f   : > { %v661_v30 = vld [vmem:[#allocation3 + $0x10] sm:$0xff]  ;;  %v672_v49 = vmul.f32 0.044715, %v668_v42  ;;  %818 = vmatpush1.bf16.msra.mxu1 %v1875_v47 }
 0x170   : > { %v665_v24 = vmul.f32 %v661_v30, %v661_v30  ;;  %v675_v55 = vadd.f32 %v671_v35, %v659_v19  ;;  %819 = vmatprep.subr.bf16.mxu1 %v1876_v48 }
 0x171   : > { %v676_v43 = vadd.f32 %v672_v49, %v660_v20 }
 0x172   : > { %v662_v31 = vld [vmem:[#allocation3 + $0x18] sm:$0xff]  ;;  %v669_v44 = vmul.f32 %v665_v24, %v661_v30  ;;  %v679_v33 = vmul.f32 0.7978846, %v675_v55 }
 0x173   : > { %v666_v40 = vmul.f32 %v662_v31, %v662_v31  ;;  %v680_v61 = vmul.f32 0.7978846, %v676_v43  ;;  %820 = vmatpush1.bf16.msra.mxu1 %v1878_v59 }
 0x174   : > { %v673_v52 = vmul.f32 0.044715, %v669_v44  ;;  %1885 = vtanh.f32 %v679_v33  ;;  %821 = vmatprep.subr.bf16.mxu1 %v1879_v60  ;;  %v1652_v60 = vld [vmem:[%s2613_s4 + $0x1] ss:$0 sm:$0xff] }
 0x175   : > { %v670_v29 = vmul.f32 %v666_v40, %v662_v31  ;;  %1887 = vtanh.f32 %v680_v61 }
 0x176   : > { %v677_v46 = vadd.f32 %v673_v52, %v661_v30 }
 0x177   : > { %v674_v53 = vmul.f32 0.044715, %v670_v29  ;;  %822 = vmatpush1.bf16.msra.mxu1 %v1881_v63 }
 0x178   : > { %v681_v62 = vmul.f32 0.7978846, %v677_v46  ;;  %823 = vmatprep.subr.bf16.mxu1 %v1882_v39 }
 0x179   : > { %v678_v57 = vadd.f32 %v674_v53, %v662_v31  ;;  %v722_v53 = vrot.slane %v717_v14, %v2381_v21 }
 0x17a   : > { %1889 = vtanh.f32 %v681_v62 }
 0x17b   : > { %v682_v34 = vmul.f32 0.7978846, %v678_v57  ;;  %824 = vmatpush1.bf16.msra.mxu1 %v1884_v0 }
 0x17d   : > { %1891 = vtanh.f32 %v682_v34 }
 0x17e   : > { %v1886_v54 = vpop.eup %1885 }
 0x17f   : > { %v1888_v2 = vpop.eup %1887  ;;  %v687_v51 = vadd.f32 1.0, %v1886_v54 }
 0x180   : > { %v688_v5 = vadd.f32 1.0, %v1888_v2 }
 0x181   : > { %v691_v6 = vmul.f32 0.5, %v687_v51 }
 0x182   : > { %v692_v58 = vmul.f32 0.5, %v688_v5 }
 0x183   : > { %v695_v10 = vmul.f32 %v691_v6, %v659_v19 }
 0x184   : > { %v1890_v3 = vpop.eup %1889  ;;  %v696_v11 = vmul.f32 %v692_v58, %v660_v20 }
 0x185   : > { %v689_v7 = vadd.f32 1.0, %v1890_v3 }
 0x186   : > { %v699_v4 = vpack.c.bf16 %v696_v11, %v695_v10 }
 0x187   : > { %v1892_v45 = vpop.eup %1891  ;;  %v693_v12 = vmul.f32 0.5, %v689_v7 }
 0x188   : > { %v690_v8 = vadd.f32 1.0, %v1892_v45  ;;  %842 = vmatmul.mubr.bf16.vlgmr.msra.gmra.mrb[0].mxu1 %v699_v4 }
 0x189   : > { %v697_v56 = vmul.f32 %v693_v12, %v661_v30  ;;  %851 = vmatprep.mubr.bf16.mxu1 %v2142_v1 }
 0x18a   : > { %v694_v50 = vmul.f32 0.5, %v690_v8 }
 0x18c   : > { %v698_v13 = vmul.f32 %v694_v50, %v662_v31 }
 0x18e   : > { %v700_v9 = vpack.c.bf16 %v698_v13, %v697_v56 }
 0x190   : > { %852 = vmatmul.mubr.bf16.gmra.mrb[4].mxu1 %v700_v9 }
 0x25b   : > { %v843_v16 = vpop.f32.mrb[0].mxu1 }
 0x25c   : > { %v845_v17 = vpop.f32.mrb[1].mxu1  ;;  %v844_v57 = vadd.f32 %v843_v16, %v722_v53 }
 0x25d   : > { %v846_v18 = vadd.f32 %v845_v17, %v726_v15  ;;  %v847_v19 = vpop.f32.mrb[2].mxu1 }
 0x25e   : > { %v849_v20 = vpop.f32.mrb[3].mxu1  ;;  %v848_v61 = vadd.f32 %v847_v19, %v722_v53 }
 0x25f   : > { %v1647_v28 = vmul.f32 -1.442695, %v846_v18  ;;  %v850_v36 = vadd.f32 %v849_v20, %v726_v15 }
 0x261   : > { %1893 = vpow2.f32 %v1647_v28  ;;  %v1648_v30 = vmul.f32 -1.442695, %v850_v36 }
 0x263   : > { %1895 = vpow2.f32 %v1648_v30  ;;  %v853_v31 = vpop.f32.mrb[4].mxu1 }
 0x264   : > { %v855_v37 = vpop.f32.mrb[5].mxu1  ;;  %v854_v0 = vadd.f32 %v853_v31, %v722_v53 }
 0x265   : > { %v856_v24 = vadd.f32 %v855_v37, %v726_v15  ;;  %v857_v40 = vpop.f32.mrb[6].mxu1 }
 0x266   : > { %v859_v41 = vpop.f32.mrb[7].mxu1  ;;  %v858_v51 = vadd.f32 %v857_v40, %v722_v53 }
 0x267   : > { %v1649_v42 = vmul.f32 -1.442695, %v856_v24  ;;  %v860_v44 = vadd.f32 %v859_v41, %v726_v15 }
 0x269   : > { %1897 = vpow2.f32 %v1649_v42  ;;  %v1650_v29 = vmul.f32 -1.442695, %v860_v44 }
 0x26b   : > { %v1894_v47 = vpop.eup %1893  ;;  %1899 = vpow2.f32 %v1650_v29 }
 0x26c   : > { %v874_v48 = vadd.f32 1.0, %v1894_v47 }
 0x26d   : > { %v1896_v35 = vpop.eup %1895 }
 0x26e   : > { %1901 = vrcp.f32 %v874_v48  ;;  %v875_v49 = vadd.f32 1.0, %v1896_v35 }
 0x270   : > { %1903 = vrcp.f32 %v875_v49 }
 0x273   : > { %v1898_v52 = vpop.eup %1897 }
 0x274   : > { %v876_v55 = vadd.f32 1.0, %v1898_v52 }
 0x275   : > { %v1900_v43 = vpop.eup %1899 }
 0x276   : > { %1905 = vrcp.f32 %v876_v55  ;;  %v877_v46 = vadd.f32 1.0, %v1900_v43 }
 0x278   : > { %v1902_v59 = vpop.eup %1901  ;;  %1907 = vrcp.f32 %v877_v46 }
 0x279   : > { %v886_v33 = vmul.f32 %v1902_v59, %v844_v57 }
 0x27a   : > { %v1904_v62 = vpop.eup %1903 }
 0x27b   : > { %890 = vst [vmem:[#allocation2] sm:$0xff] %v886_v33  ;;  %v902_v34 = vmul.f32 %v1652_v60, %v886_v33  ;;  %v887_v63 = vmul.f32 %v1904_v62, %v848_v61 }
 0x27d   : > { %906 = vst [vmem:[#allocation3] sm:$0xff] %v902_v34  ;;  %891 = vst [vmem:[#allocation2 + $0x8] sm:$0xff] %v887_v63  ;;  %v903_v39 = vmul.f32 %v1652_v60, %v887_v63 }
 0x27f   : > { %907 = vst [vmem:[#allocation3 + $0x8] sm:$0xff] %v903_v39 }
 0x280   : > { %v1906_v54 = vpop.eup %1905 }
 0x281   : > { %v888_v2 = vmul.f32 %v1906_v54, %v854_v0 }
 0x282   : > { %v1908_v3 = vpop.eup %1907 }
 0x283   : > { %892 = vst [vmem:[#allocation2 + $0x10] sm:$0xff] %v888_v2  ;;  %v904_v5 = vmul.f32 %v1652_v60, %v888_v2  ;;  %v889_v45 = vmul.f32 %v1908_v3, %v858_v51 }
 0x285   : > { %908 = vst [vmem:[#allocation3 + $0x10] sm:$0xff] %v904_v5  ;;  %893 = vst [vmem:[#allocation2 + $0x18] sm:$0xff] %v889_v45  ;;  %v905_v6 = vmul.f32 %v1652_v60, %v889_v45 }
 0x287   : > { %909 = vst [vmem:[#allocation3 + $0x18] sm:$0xff] %v905_v6 }
 0x288 LB: >> { %s2469_s16 = sshll.u32 %s2135_s14, 3  ;;  %s915_s14 = sadd.s32 1, %s2135_s14   ;;  %s2135_s14 = sphi %s2463_s14, %s915_s14  }
 0x289   : >> { %s920_s15 = ssub.s32 16, %s2469_s16  ;;  %s917_s20 = scalar_lea.vmem [#allocation2], %s2469_s16 }
 0x28a   : >> { %s937_s17 = ssub.s32 232, %s2469_s16  ;;  %s1528_s22 = scalar_lea.vmem [#allocation7], %s920_s15 }
 0x28b   : >> { %v1654_v58 = vld [vmem:[%s1528_s22 + $0x100] sm:$0xff]  ;;  %s957_s25 = ssub.s32 200, %s2469_s16  ;;  %v2479_v50 = vld [vmem:[%s1528_s22 + $0x108] sm:$0xff]  ;;  %s1530_s11 = scalar_lea.vmem [#allocation7], %s937_s17 }
 0x28c   : >> { %v918_v7 = vld [vmem:[%s917_s20] sm:$0xff]  ;;  %v2481_v4 = vld [vmem:[%s917_s20 + $0x10] sm:$0xff]  ;;  %s977_s30 = ssub.s32 168, %s2469_s16  ;;  %v2487_v15 = vld [vmem:[%s1530_s11 + $0x108] sm:$0xff]  ;;  %s1532_s24 = scalar_lea.vmem [#allocation7], %s957_s25 }
 0x28d   : >> { %v928_v8 = vrot.slane %v918_v7, %v2381_v21  ;;  %v944_v10 = vrot.slane %v918_v7, %v2384_v22  ;;  %v964_v11 = vrot.slane %v918_v7, %v2386_v23  ;;  %v984_v12 = vrot.slane %v918_v7, %v2391_v25  ;;  %v1656_v56 = vld [vmem:[%s1530_s11 + $0x100] sm:$0xff]  ;;  %s997_s23 = ssub.s32 136, %s2469_s16  ;;  %v1659_v28 = vld [vmem:[%s1532_s24 + $0x108] sm:$0xff]  ;;  %s1534_s29 = scalar_lea.vmem [#allocation7], %s977_s30 }
 0x28e   : >> { %v1004_v13 = vrot.slane %v918_v7, %v2393_v26  ;;  %v1024_v9 = vrot.slane %v918_v7, %v2395_v27  ;;  %v1044_v14 = vrot.slane %v918_v7, %v2401_v32  ;;  %v1658_v18 = vld [vmem:[%s1532_s24 + $0x100] sm:$0xff]  ;;  %s1017_s26 = ssub.s32 104, %s2469_s16  ;;  %v2493_v37 = vld [vmem:[%s1534_s29 + $0x108] sm:$0xff]  ;;  %v932_v24 = vrot.slane %v2481_v4, %v2381_v21  ;;  %s1536_s21 = scalar_lea.vmem [#allocation7], %s997_s23 }
 0x28f   : >> { %v933_v16 = vmul.f32 %v1654_v58, %v928_v8  ;;  %v949_v17 = vmul.f32 %v1656_v56, %v944_v10  ;;  %v934_v19 = vmul.f32 %v2479_v50, %v928_v8  ;;  %v950_v20 = vmul.f32 %v2487_v15, %v944_v10  ;;  %v1660_v30 = vld [vmem:[%s1534_s29 + $0x100] sm:$0xff]  ;;  %s1037_s28 = ssub.s32 72, %s2469_s16  ;;  %v1663_v48 = vld [vmem:[%s1536_s21 + $0x108] sm:$0xff]  ;;  %s1538_s15 = scalar_lea.vmem [#allocation7], %s1017_s26 }
 0x290   : >> { %v969_v36 = vmul.f32 %v1658_v18, %v964_v11  ;;  %v970_v31 = vmul.f32 %v1659_v28, %v964_v11  ;;  %v948_v40 = vrot.slane %v2481_v4, %v2384_v22  ;;  %v989_v42 = vmul.f32 %v1660_v30, %v984_v12  ;;  %v1662_v44 = vld [vmem:[%s1536_s21 + $0x100] sm:$0xff]  ;;  %s1057_s20 = ssub.s32 40, %s2469_s16  ;;  %v1665_v52 = vld [vmem:[%s1538_s15 + $0x108] sm:$0xff]  ;;  %s1540_s17 = scalar_lea.vmem [#allocation7], %s1037_s28 }
 0x291   : >> { %v953_v41 = vadd.f32 %v949_v17, %v933_v16  ;;  %v954_v29 = vadd.f32 %v950_v20, %v934_v19  ;;  %v990_v47 = vmul.f32 %v2493_v37, %v984_v12  ;;  %v1664_v35 = vld [vmem:[%s1538_s15 + $0x100] sm:$0xff]  ;;  %v1064_v49 = vrot.slane %v918_v7, %v2410_v38  ;;  %v1667_v33 = vld [vmem:[%s1540_s17 + $0x108] sm:$0xff]  ;;  %s1542_s22 = scalar_lea.vmem [#allocation7], %s1057_s20  ;;  %p912_p7 = scmp.ge.s32.totalorder %s915_s14, 2  }
 0x292   : >> { %v935_v53 = vmul.f32 %v1654_v58, %v932_v24  ;;  %v951_v55 = vmul.f32 %v1656_v56, %v948_v40  ;;  %v1009_v46 = vmul.f32 %v1662_v44, %v1004_v13  ;;  %v1666_v57 = vld [vmem:[%s1540_s17 + $0x100] sm:$0xff]  ;;  %v1010_v60 = vmul.f32 %v1663_v48, %v1004_v13  ;;  %v1669_v63 = vld [vmem:[%s1542_s22 + $0x108] sm:$0xff]  ;;  %1273 = vmatprep.mubr.bf16.mxu0 (%p912_p7), %v2142_v1  ;;  %s1716_s24 = sshll.u32 (%p912_p7), %s2217_s13, 8  ;;  %s1479_s23 = sshll.u32 (%p912_p7), %s2367_s27, 4  ;;  %s2562_s23 = int_to_ptr.vmem [resolvable:$true] %s1479_s23 }
 0x293   : >> { %v973_v43 = vadd.f32 %v969_v36, %v953_v41  ;;  %v974_v59 = vadd.f32 %v970_v31, %v954_v29  ;;  %v1029_v61 = vmul.f32 %v1664_v35, %v1024_v9  ;;  %v1668_v62 = vld [vmem:[%s1542_s22 + $0x100] sm:$0xff]  ;;  %v1030_v34 = vmul.f32 %v1665_v52, %v1024_v9  ;;  %s2560_s21 = scalar_lea.hbm (%p912_p7), %s2618_s9, %s1716_s24  ;;  %s2568_s13 = scalar_lea.sflag (%p912_p7), [#allocation6], %s368_s18 }
 0x294   : >> { %v955_v39 = vadd.f32 %v951_v55, %v935_v53  ;;  %v968_v0 = vrot.slane %v2481_v4, %v2386_v23  ;;  %v1049_v2 = vmul.f32 %v1666_v57, %v1044_v14  ;;  %v1050_v3 = vmul.f32 %v1667_v33, %v1044_v14  ;;  %v1077_v29 = vld [vmem:[#allocation3] sm:$0xff]  ;;  %s2049_s28 = scalar_lea.vmem (%p912_p7), %s2562_s23, 256  ;;  %p2642_p11 = scmp.ne.s32.totalorder (%p912_p7), %s2631_s19, 0 }
 0x295   : >> { %v993_v54 = vadd.f32 %v989_v42, %v973_v43  ;;  %v994_v51 = vadd.f32 %v990_v47, %v974_v59  ;;  %v988_v45 = vrot.slane %v2481_v4, %v2391_v25  ;;  %v1008_v6 = vrot.slane %v2481_v4, %v2393_v26  ;;  %v1921_v25 = vld [vmem:[#allocation9 + $0xc4] ss:$8 sps:$4 sm:$0xff] (%p912_p7)   ;;  %p2050_p8 = scmp.ne.s32.totalorder (%p912_p7), %s2562_s23, %s2049_s28  ;;  %s2143_s15 = smov (%p912_p7), [#allocation10]  }
 0x296   : >> { %v971_v5 = vmul.f32 %v1658_v18, %v968_v0  ;;  %v1028_v7 = vrot.slane %v2481_v4, %v2395_v27  ;;  %v1069_v8 = vmul.f32 %v1668_v62, %v1064_v49  ;;  %v1070_v11 = vmul.f32 %v1669_v63, %v1064_v49  ;;  %s2053_s20 = sshll.u32 (%p912_p7), %s2143_s15, 4  ;;  %s2054_s20 = int_to_ptr.vmem [resolvable:$false] %s2053_s20 }
 0x297   : >> { %v1013_v58 = vadd.f32 %v1009_v46, %v993_v54  ;;  %v1014_v10 = vadd.f32 %v1010_v60, %v994_v51  ;;  %v991_v56 = vmul.f32 %v1660_v30, %v988_v45  ;;  %v1011_v13 = vmul.f32 %v1662_v44, %v1008_v6  ;;  %v1078_v30 = vld [vmem:[#allocation3 + $0x8] sm:$0xff]  ;;  %p2051_p13 = pnand (%p912_p7), %p2050_p8, %p2642_p11  ;;  %s2055_s17 = scalar_lea.vmem (%p912_p7), %s2054_s20, 512 }
 0x298   : >> { %v975_v12 = vadd.f32 %v971_v5, %v955_v39  ;;  %v1048_v9 = vrot.slane %v2481_v4, %v2401_v32  ;;  %v1031_v17 = vmul.f32 %v1664_v35, %v1028_v7  ;;  %v1068_v18 = vrot.slane %v2481_v4, %v2410_v38  ;;  %v1917_v5 = vld [vmem:[#allocation9 + $0xa0] ss:$8 sps:$4 sm:$0xff] (%p912_p7)   ;;  %p2056_p6 = scmp.lt.s32.totalorder (%p912_p7), %s2562_s23, %s2054_s20  ;;  %p2057_p9 = scmp.lt.s32.totalorder (%p912_p7), %s2055_s17, %s2049_s28 }
 0x299   : >> { %v1033_v14 = vadd.f32 %v1029_v61, %v1013_v58  ;;  %v1034_v16 = vadd.f32 %v1030_v34, %v1014_v10  ;;  %v936_v20 = vmul.f32 %v2479_v50, %v932_v24  ;;  %v952_v36 = vmul.f32 %v2487_v15, %v948_v40  ;;  %v1079_v40 = vld [vmem:[#allocation3 + $0x10] sm:$0xff]  ;;  %v1923_v38 = vld [vmem:[#allocation9 + $0xc0] ss:$8 sps:$4 sm:$0xff] (%p912_p7)   ;;  %p2052_p1 = pneg (%p912_p7), %p2051_p13 }
 0x29a   : >> { %v995_v19 = vadd.f32 %v991_v56, %v975_v12  ;;  %v972_v31 = vmul.f32 %v1659_v28, %v968_v0  ;;  %v1051_v47 = vmul.f32 %v1666_v57, %v1048_v9  ;;  %v992_v53 = vmul.f32 %v2493_v37, %v988_v45  ;;  %v1918_v45 = vld [vmem:[#allocation9 + $0xb4] ss:$8 sps:$4 sm:$0xff] (%p912_p7)   ;;  %p2058_p2 = por (%p912_p7), %p2057_p9, %p2056_p6 }
 0x29b   : >> { %v1053_v41 = vadd.f32 %v1049_v2, %v1033_v14  ;;  %v1054_v42 = vadd.f32 %v1050_v3, %v1034_v16  ;;  %v956_v49 = vadd.f32 %v952_v36, %v936_v20  ;;  %v1071_v46 = vmul.f32 %v1668_v62, %v1068_v18  ;;  %v1080_v2 = vld [vmem:[#allocation3 + $0x18] sm:$0xff]  ;;  %v1915_v3 = vld [vmem:[#allocation9 + $0xa4] ss:$8 sps:$4 sm:$0xff] (%p912_p7)  }
 0x29c   : >> { %v1015_v44 = vadd.f32 %v1011_v13, %v995_v19  ;;  %v1012_v59 = vmul.f32 %v1663_v48, %v1008_v6  ;;  %v1032_v28 = vmul.f32 %v1665_v52, %v1028_v7  ;;  %v1052_v57 = vmul.f32 %v1667_v33, %v1048_v9  ;;  %v1909_v48 = vld [vmem:[#allocation9 + $0x84] ss:$8 sps:$4 sm:$0xff] (%p912_p7)   ;;  %v1911_v52 = vld [vmem:[#allocation9 + $0x80] ss:$8 sps:$4 sm:$0xff] (%p912_p7)   ;;  %v1912_v33 = vld [vmem:[#allocation9 + $0x94] ss:$8 sps:$4 sm:$0xff] (%p912_p7)   ;;  %p2059_p0 = pnand (%p912_p7), %p2058_p2, %p2052_p1 }
 0x29d   : >> { %v1073_v55 = vadd.f32 %v1069_v8, %v1053_v41  ;;  %v1074_v35 = vadd.f32 %v1070_v11, %v1054_v42  ;;  %v976_v4 = vadd.f32 %v972_v31, %v956_v49  ;;  %v1072_v37 = vmul.f32 %v1669_v63, %v1068_v18  ;;  %1241 = vmatprep.subr.bf16.mxu0 (%p912_p7), %v1909_v48  ;;  %v1914_v63 = vld [vmem:[#allocation9 + $0x90] ss:$8 sps:$4 sm:$0xff] (%p912_p7)   ;;  %v1924_v12 = vld [vmem:[#allocation9 + $0xd4] ss:$8 sps:$4 sm:$0xff] (%p912_p7)   ;;  %v1927_v42 = vld [vmem:[#allocation9 + $0xe4] ss:$8 sps:$4 sm:$0xff] (%p912_p7)  }
 0x29e   : >> { %v1035_v43 = vadd.f32 %v1031_v17, %v1015_v44  ;;  %1242 = vmatpush1.bf16.msra.mxu0 (%p912_p7), %v1911_v52  ;;  %v1920_v6 = vld [vmem:[#allocation9 + $0xb0] ss:$8 sps:$4 sm:$0xff] (%p912_p7)   ;;  %v1929_v49 = vld [vmem:[#allocation9 + $0xe0] ss:$8 sps:$4 sm:$0xff] (%p912_p7)  }
 0x29f   : >> { %v1081_v60 = vadd.f32 %v1077_v29, %v1073_v55  ;;  %v1082_v50 = vadd.f32 %v1078_v30, %v1074_v35  ;;  %v996_v15 = vadd.f32 %v992_v53, %v976_v4  ;;  %1243 = vmatprep.subr.bf16.mxu0 (%p912_p7), %v1912_v33  ;;  %v1926_v41 = vld [vmem:[#allocation9 + $0xd0] ss:$8 sps:$4 sm:$0xff] (%p912_p7)   ;;  %v1930_v53 = vld [vmem:[#allocation9 + $0xf4] ss:$8 sps:$4 sm:$0xff] (%p912_p7)   ;;  %v1938_v52 = vld [vmem:[%s2616_s7 + $0x28] sm:$0xff] (%p912_p7)  }
 0x2a0   : >> { %v1055_v24 = vadd.f32 %v1051_v47, %v1035_v43  ;;  %v1932_v55 = vld [vmem:[#allocation9 + $0xf0] ss:$8 sps:$4 sm:$0xff] (%p912_p7)   ;;  %v1937_v48 = vld [vmem:[%s2616_s7 + $0x20] sm:$0xff] (%p912_p7)  }
 0x2a1   : >> { %1085 = vst [vmem:[#allocation3] sm:$0xff] %v1081_v60  ;;  %1086 = vst [vmem:[#allocation3 + $0x8] sm:$0xff] %v1082_v50  ;;  %v1016_v34 = vadd.f32 %v1012_v59, %v996_v15  ;;  %v1939_v33 = vld [vmem:[%s2616_s7 + $0x30] sm:$0xff] (%p912_p7)  }
 0x2a2   : >> { %v1075_v61 = vadd.f32 %v1071_v46, %v1055_v24  ;;  %1244 = vmatpush1.bf16.msra.mxu0 (%p912_p7), %v1914_v63  ;;  %v1940_v63 = vld [vmem:[%s2616_s7 + $0x38] sm:$0xff] (%p912_p7)  }
 0x2a3   : >> { %v1036_v0 = vadd.f32 %v1032_v28, %v1016_v34  ;;  %1245 = vmatprep.subr.bf16.mxu0 (%p912_p7), %v1915_v3  ;;  %v1670_v3 = vld [vmem:[%s2615_s6 + $0x2] sm:$0x3] (%p912_p7) }
 0x2a4   : >> { %v1083_v39 = vadd.f32 %v1079_v40, %v1075_v61 }
 0x2a5   : >> { %v1056_v54 = vadd.f32 %v1052_v57, %v1036_v0  ;;  %914 = sbr.rel (!%p912_p7) target bundleno = 648 (0x288), region = 151 }
 0x2a6   : >> { %1087 = vst [vmem:[#allocation3 + $0x10] sm:$0xff] %v1083_v39  ;;  %1246 = vmatpush1.bf16.msra.mxu0 (%p912_p7), %v1917_v5  ;;  %v1158_v5 = vrot.slane (%p912_p7), %v1670_v3, %v2384_v22 }
 0x2a7   : >> { %v1076_v62 = vadd.f32 %v1072_v37, %v1056_v54  ;;  %1247 = vmatprep.subr.bf16.mxu0 (%p912_p7), %v1918_v45 }
 0x2a8   : > { %v1089_v7 = vld [vmem:[#allocation3] sm:$0xff] (%p912_p7)  ;;  %v1090_v58 = vld [vmem:[#allocation3 + $0x8] sm:$0xff] (%p912_p7) }
 0x2a9   : >> { %v1084_v51 = vadd.f32 %v1080_v2, %v1076_v62  ;;  %v1093_v8 = vmul.f32 (%p912_p7), %v1089_v7, %v1089_v7  ;;  %v1094_v26 = vmul.f32 (%p912_p7), %v1090_v58, %v1090_v58  ;;  %v1933_v2 = vld [vmem:[%s2616_s7] sm:$0xff] (%p912_p7)   ;;  %v1934_v62 = vld [vmem:[%s2616_s7 + $0x8] sm:$0xff] (%p912_p7)  }
 0x2aa   : > { %1248 = vmatpush1.bf16.msra.mxu0 (%p912_p7), %v1920_v6  ;;  %1747 = vmatprep.subr.bf16.mxu1 (%p912_p7), %v1933_v2 }
 0x2ab   : >> { %1088 = vst [vmem:[#allocation3 + $0x18] sm:$0xff] %v1084_v51  ;;  %v1097_v11 = vmul.f32 (%p912_p7), %v1093_v8, %v1089_v7  ;;  %v1098_v56 = vmul.f32 (%p912_p7), %v1094_v26, %v1090_v58  ;;  %1249 = vmatprep.subr.bf16.mxu0 (%p912_p7), %v1921_v25  ;;  %1748 = vmatpush3.bf16.msra.mxu1 (%p912_p7), %v1933_v2  ;;  %v1935_v51 = vld [vmem:[%s2616_s7 + $0x10] sm:$0xff] (%p912_p7)  }
 0x2ac   : > { %1749 = vmatprep.subr.bf16.mxu1 %v1934_v62 }
 0x2ad   : > { %v1091_v10 = vld [vmem:[#allocation3 + $0x10] sm:$0xff]  ;;  %v1101_v14 = vmul.f32 0.044715, %v1097_v11  ;;  %v1102_v16 = vmul.f32 0.044715, %v1098_v56 }
 0x2ae   : > { %v1095_v27 = vmul.f32 %v1091_v10, %v1091_v10  ;;  %1250 = vmatpush1.bf16.msra.mxu0 %v1923_v38 }
 0x2af   : > { %v1105_v19 = vadd.f32 %v1101_v14, %v1089_v7  ;;  %v1106_v20 = vadd.f32 %v1102_v16, %v1090_v58  ;;  %1251 = vmatprep.subr.bf16.mxu0 %v1924_v12  ;;  %1750 = vmatpush3.bf16.msra.mxu1 %v1934_v62 }
 0x2b0   : > { %v1099_v13 = vmul.f32 %v1095_v27, %v1091_v10  ;;  %1751 = vmatprep.subr.bf16.mxu1 %v1935_v51 }
 0x2b1   : > { %v1109_v29 = vmul.f32 0.7978846, %v1105_v19  ;;  %v1110_v30 = vmul.f32 0.7978846, %v1106_v20 }
 0x2b2   : > { %v1092_v23 = vld [vmem:[#allocation3 + $0x18] sm:$0xff]  ;;  %v1103_v17 = vmul.f32 0.044715, %v1099_v13  ;;  %1252 = vmatpush1.bf16.msra.mxu0 %v1926_v41 }
 0x2b3   : > { %v1096_v32 = vmul.f32 %v1092_v23, %v1092_v23  ;;  %1941 = vtanh.f32 %v1109_v29  ;;  %1253 = vmatprep.subr.bf16.mxu0 %v1927_v42  ;;  %1752 = vmatpush3.bf16.msra.mxu1 %v1935_v51 }
 0x2b4   : > { %v1107_v36 = vadd.f32 %v1103_v17, %v1091_v10  ;;  %1943 = vtanh.f32 %v1110_v30 }
 0x2b5   : > { %v1100_v9 = vmul.f32 %v1096_v32, %v1092_v23 }
 0x2b6   : > { %v1111_v44 = vmul.f32 0.7978846, %v1107_v36  ;;  %1254 = vmatpush1.bf16.msra.mxu0 %v1929_v49 }
 0x2b7   : > { %v1104_v18 = vmul.f32 0.044715, %v1100_v9  ;;  %1255 = vmatprep.subr.bf16.mxu0 %v1930_v53 }
 0x2b8   : > { %1945 = vtanh.f32 %v1111_v44 }
 0x2b9   : > { %v1108_v31 = vadd.f32 %v1104_v18, %v1092_v23  ;;  %v1154_v18 = vrot.slane %v1670_v3, %v2381_v21 }
 0x2ba   : > { %1256 = vmatpush1.bf16.msra.mxu0 %v1932_v55 }
 0x2bb   : > { %v1112_v47 = vmul.f32 0.7978846, %v1108_v31 }
 0x2bd   : > { %1947 = vtanh.f32 %v1112_v47  ;;  %v1942_v35 = vpop.eup %1941 }
 0x2be   : > { %v1944_v43 = vpop.eup %1943  ;;  %v1117_v46 = vadd.f32 1.0, %v1942_v35 }
 0x2bf   : > { %v1118_v59 = vadd.f32 1.0, %v1944_v43 }
 0x2c0   : > { %v1121_v50 = vmul.f32 0.5, %v1117_v46 }
 0x2c1   : > { %v1122_v15 = vmul.f32 0.5, %v1118_v59  ;;  %v1691_v59 = vld [vmem:[%s2617_s8] ss:$0 sm:$0xff] }
 0x2c2   : > { %v1946_v4 = vpop.eup %1945  ;;  %v1125_v40 = vmul.f32 %v1121_v50, %v1089_v7 }
 0x2c3   : > { %v1119_v24 = vadd.f32 1.0, %v1946_v4  ;;  %v1126_v61 = vmul.f32 %v1122_v15, %v1090_v58 }
 0x2c5   : > { %v1123_v34 = vmul.f32 0.5, %v1119_v24  ;;  %v1129_v39 = vpack.c.bf16 %v1126_v61, %v1125_v40 }
 0x2c7   : > { %v1948_v60 = vpop.eup %1947  ;;  %1274 = vmatmul.mubr.bf16.vlgmr.msra.gmra.mrb[4].mxu0 %v1129_v39  ;;  %v1127_v0 = vmul.f32 %v1123_v34, %v1091_v10 }
 0x2c8   : > { %v1120_v28 = vadd.f32 1.0, %v1948_v60  ;;  %1283 = vmatprep.mubr.bf16.mxu0 %v2142_v1  ;;  %v1936_v1 = vld [vmem:[%s2616_s7 + $0x18] sm:$0xff]  }
 0x2c9   : > { %1753 = vmatprep.subr.bf16.mxu1 %v1936_v1 }
 0x2ca   : > { %v1124_v57 = vmul.f32 0.5, %v1120_v28  ;;  %1754 = vmatpush3.bf16.msra.mxu1 %v1936_v1 }
 0x2cb   : > { %1755 = vmatprep.subr.bf16.mxu1 %v1937_v48 }
 0x2cc   : > { %v1128_v37 = vmul.f32 %v1124_v57, %v1092_v23 }
 0x2ce   : > { %v1130_v54 = vpack.c.bf16 %v1128_v37, %v1127_v0  ;;  %1756 = vmatpush3.bf16.msra.mxu1 %v1937_v48 }
 0x2cf   : > { %1757 = vmatprep.subr.bf16.mxu1 %v1938_v52 }
 0x2d0   : > { %1284 = vmatmul.mubr.bf16.gmra.mrb[8].mxu0 %v1130_v54 }
 0x2d2   : > { %1758 = vmatpush3.bf16.msra.mxu1 %v1938_v52 }
 0x2d3   : > { %1759 = vmatprep.subr.bf16.mxu1 %v1939_v33 }
 0x2d6   : > { %1760 = vmatpush3.bf16.msra.mxu1 %v1939_v33 }
 0x2d7   : > { %1761 = vmatprep.subr.bf16.mxu1 %v1940_v63 }
 0x2da   : > { %1762 = vmatpush3.bf16.msra.mxu1 %v1940_v63 }
 0x39a   : > { %v1275_v45 = vpop.f32.mrb[4].mxu0 }
 0x39b   : > { %v1277_v6 = vpop.f32.mrb[5].mxu0  ;;  %v1276_v31 = vadd.f32 %v1275_v45, %v1154_v18 }
 0x39c   : > { %v1278_v7 = vadd.f32 %v1277_v6, %v1158_v5  ;;  %v1279_v58 = vpop.f32.mrb[6].mxu0 }
 0x39d   : > { %v1281_v8 = vpop.f32.mrb[7].mxu0  ;;  %v1280_v42 = vadd.f32 %v1279_v58, %v1154_v18 }
 0x39e   : > { %v1687_v10 = vmul.f32 -1.442695, %v1278_v7  ;;  %v1282_v23 = vadd.f32 %v1281_v8, %v1158_v5 }
 0x3a0   : > { %1949 = vpow2.f32 %v1687_v10  ;;  %v1688_v25 = vmul.f32 -1.442695, %v1282_v23 }
 0x3a2   : > { %1951 = vpow2.f32 %v1688_v25 }
 0x3a3   : > { %v1285_v26 = vpop.f32.mrb[8].mxu0 }
 0x3a4   : > { %v1287_v27 = vpop.f32.mrb[9].mxu0  ;;  %v1286_v49 = vadd.f32 %v1285_v26, %v1154_v18 }
 0x3a5   : > { %v1288_v32 = vadd.f32 %v1287_v27, %v1158_v5  ;;  %v1289_v38 = vpop.f32.mrb[10].mxu0 }
 0x3a6   : > { %v1291_v11 = vpop.f32.mrb[11].mxu0  ;;  %v1290_v55 = vadd.f32 %v1289_v38, %v1154_v18 }
 0x3a7   : > { %v1689_v12 = vmul.f32 -1.442695, %v1288_v32  ;;  %v1292_v56 = vadd.f32 %v1291_v11, %v1158_v5 }
 0x3a9   : > { %1953 = vpow2.f32 %v1689_v12  ;;  %v1690_v13 = vmul.f32 -1.442695, %v1292_v56 }
 0x3aa   : > { %v1950_v22 = vpop.eup %1949 }
 0x3ab   : > { %1955 = vpow2.f32 %v1690_v13  ;;  %v1306_v9 = vadd.f32 1.0, %v1950_v22 }
 0x3ac   : > { %v1952_v14 = vpop.eup %1951 }
 0x3ad   : > { %1957 = vrcp.f32 %v1306_v9  ;;  %v1307_v16 = vadd.f32 1.0, %v1952_v14 }
 0x3af   : > { %1959 = vrcp.f32 %v1307_v16 }
 0x3b3   : > { %v1954_v17 = vpop.eup %1953 }
 0x3b4   : > { %v1308_v19 = vadd.f32 1.0, %v1954_v17 }
 0x3b5   : > { %v1956_v20 = vpop.eup %1955 }
 0x3b6   : > { %1961 = vrcp.f32 %v1308_v19  ;;  %v1309_v36 = vadd.f32 1.0, %v1956_v20 }
 0x3b7   : > { %v1958_v41 = vpop.eup %1957 }
 0x3b8   : > { %1963 = vrcp.f32 %v1309_v36  ;;  %v1318_v29 = vmul.f32 %v1958_v41, %v1276_v31 }
 0x3b9   : > { %v1960_v30 = vpop.eup %1959 }
 0x3ba   : > { %v1319_v44 = vmul.f32 %v1960_v30, %v1280_v42 }
 0x3bc   : > { %v1322_v47 = vpack.c.bf16 %v1319_v44, %v1318_v29 }
 0x3be   : > { %1763 = vmatprep.mubr.bf16.mxu1 %v1322_v47 }
 0x3c0   : > { %v1962_v53 = vpop.eup %1961 }
 0x3c1   : > { %v1320_v35 = vmul.f32 %v1962_v53, %v1286_v49 }
 0x3c2   : > { %v1964_v21 = vpop.eup %1963 }
 0x3c3   : > { %v1321_v43 = vmul.f32 %v1964_v21, %v1290_v55 }
 0x3c5   : > { %v1323_v46 = vpack.c.bf16 %v1321_v43, %v1320_v35 }
 0x3c7   : > { %1764 = vmatmul.mubr.bf16.vlgmr.msra.gmra.mrb[8].mxu1 %v1323_v46 }
 0x49a   : > { %v1765_v4 = vpop.f32.mrb[8].mxu1 }
 0x49b   : > { %v1429_v60 = vpop.f32.mrb[9].mxu1  ;;  %v1438_v24 = vadd.f32 %v1765_v4, %v1691_v59 }
 0x49c   : > { %v1766_v50 = vpop.f32.mrb[10].mxu1  ;;  %v1430_v40 = vadd.f32 %v1691_v59, %v1429_v60 }
 0x49d   : > { %v1441_v15 = vadd.f32 %v1766_v50, %v1691_v59  ;;  %v1432_v28 = vpop.f32.mrb[11].mxu1 }
 0x49e   : > { %v1433_v61 = vadd.f32 %v1691_v59, %v1432_v28 }
 0x49f   : > { %v1725_v34 = vpack.c.bf16 %v1441_v15, %v1438_v24 }
 0x4a0   : > { %v1720_v57 = vpack.c.bf16 %v1433_v61, %v1430_v40 }
 0x4a1   : > { %1727 = vst [vmem:[%s2367_s27 + $0x8] sm:$0xff] %v1725_v34  }
 0x4a2   : > { %1721 = vst [vmem:[%s2367_s27] sm:$0xff] %v1720_v57  }
 0x4a3   : > { %2062 = shalt.err (!%p2059_p0)
}
 0x4a4   : > { %s2063_s18 = scalar_lea.hbm %s2560_s21, 256  ;;  %s2067_s14 = scalar_lea.hbm %s2618_s9, 512 }
 0x4a5   : > { %p2064_p3 = scmp.ne.s32.totalorder %s2560_s21, %s2063_s18  ;;  %p2068_p12 = scmp.lt.u32.totalorder %s2560_s21, %s2618_s9 }
 0x4a6   : > { %p2069_p4 = scmp.lt.u32.totalorder %s2067_s14, %s2063_s18  ;;  %p2071_p8 = scmp.lt.u32.totalorder %s2063_s18, %s2560_s21 }
 0x4a7   : > { %p2065_p5 = pnand %p2064_p3, %p2642_p11 }
 0x4a8   : > { %p2070_p7 = por %p2069_p4, %p2068_p12 }
 0x4a9   : > { %p2066_p10 = pneg %p2065_p5 }
 0x4aa   : > { %p2072_p13 = por %p2071_p8, %p2070_p7 }
 0x4ac   : > { %p2073_p1 = pnand %p2072_p13, %p2066_p10 }
 0x4ae   : > { %2076 = shalt.err (!%p2073_p1)
}
 0x4af   : > { %s2144_s11 = smov 64   ;;  %s2145_s30 = smov 4  }
 0x4b0   : > { %1780 = dma.vmem_to_hbm [thread:$0]  (%p2642_p11), %s2562_s23, 256, %s2560_s21, %s2568_s13, %s2144_s11, %s2144_s11, %s2145_s30  }
 0x4b1 PF: > { %s2643_s24 = sld [smem:[#allocation14_spill]]  ;;  %s2644_s29 = sld [smem:[#allocation18_spill]] }
 0x4b2   : > { %p1802_p6 = scmp.ge.s32.totalorder %s2127_s12, 2 }
 0x4b7   : > { %s1494_s26 = sand.u32 1, %s2643_s24   ;;  %p2645_p9 = scmp.ne.s32.totalorder %s2644_s29, 0 }
 0x4b8   : > { %s1495_s28 = scalar_lea.sflag [#allocation6], %s1494_s26 }
 0x4b9   : > { %p1793_p2 = pnand %p1802_p6, %p2645_p9 }
 0x4bb   : > { %2110 = dma.done.wait (!%p1793_p2), %s1495_s28, 256  }
 0x4bc   : > { %2112 = vsyncadd (!%p1793_p2), %s1495_s28, 4294967040  ;;  %s2646_s12 = sld [smem:[#allocation16_spill]]  ;;  %s2647_s15 = sld [smem:[#allocation15_spill]] }
 0x4bd   : > { %s2648_s11 = sld [smem:[#allocation17_spill]]  ;;  %s2649_s30 = smov %s2119_s10 }
 0x4c2   : > { %p21_p0 = scmp.ge.s32.totalorder %s2646_s12, 4   ;;  %s2650_s10 = smov %s2647_s15 }
 0x4c4   :  { %23 = sbr.rel (!%p21_p0) target bundleno = 5 (0x5), region = 162 }
 0x4cb   :  { %1500 = vsyncpa [#allocation5], 1 }
 0x4cc   :  { %1502 = vsyncpa [#allocation5 + $0x1], 1 }
 0x4cd   :  { %1503 = vsyncpa [#allocation8], 1 }
 0x4ce   :  { %1504 = vsyncpa [#allocation6], 1 }
 0x4cf   :  { %1506 = vsyncpa [#allocation6 + $0x1], 1 }

</bundles_post_ra>
